<compile_context>
chip_gen: v5e
topology: v5e:2x2
jax: 0.10.0
libtpu: 0.0.40
codegen_flags: <defaults>
</compile_context>

<pallas_src>
import jax
import jax.numpy as jnp
from jax import lax
from jax.experimental import pallas as pl
from jax.experimental.pallas import tpu as pltpu


# ----------------------------------------------------------------------------
# Kernel 1: fused cv1 + cv2  (1x1 conv + folded BN + SiLU, shared input read)
#   blocks: x (1, Cin, TP)  ->  y1 (1, C_, TP), y2 (1, C_, TP)   (bf16 out)
# ----------------------------------------------------------------------------
def _cv12_kernel(x_ref, w1_ref, s1_ref, b1_ref, w2_ref, s2_ref, b2_ref,
                 y1_ref, y2_ref):
    x = x_ref[0].astype(jnp.bfloat16)                          # (Cin, TP)
    for w_ref, s_ref, b_ref, o_ref in ((w1_ref, s1_ref, b1_ref, y1_ref),
                                       (w2_ref, s2_ref, b2_ref, y2_ref)):
        y = jnp.dot(w_ref[...], x, preferred_element_type=jnp.float32)
        y = y * s_ref[...] + b_ref[...]                        # (C_, TP) f32
        o_ref[0] = (y * jax.nn.sigmoid(y)).astype(o_ref.dtype)


# ----------------------------------------------------------------------------
# Kernel 2: fused concat + cv3 (1x1 conv + folded BN + SiLU)
#   out = SiLU(s * (Wa @ m + Wb @ y2) + b)  -- concat folded into two matmuls
# ----------------------------------------------------------------------------
def _cv3_kernel(m_ref, y2_ref, wa_ref, wb_ref, s_ref, b_ref, o_ref):
    # TODO(synk): for tiny c_ one could pre-concatenate [Wa|Wb] and do a single
    #             K=2*c_ push; negligible once c_ >= 128.
    a = m_ref[0].astype(jnp.bfloat16)                          # (C_, TP)
    b2 = y2_ref[0].astype(jnp.bfloat16)                        # (C_, TP)
    y = (jnp.dot(wa_ref[...], a, preferred_element_type=jnp.float32) +
         jnp.dot(wb_ref[...], b2, preferred_element_type=jnp.float32))
    y = y * s_ref[...] + b_ref[...]
    o_ref[0] = (y * jax.nn.sigmoid(y)).astype(o_ref.dtype)


# ----------------------------------------------------------------------------
# Kernel 3: the whole bottleneck chain.
#   grid = (N, n_blocks); per (n, j):
#     t = BN(dconv(m, d=2));  m = SiLU(m + BN(dconv(t, d=3)))
#   m lives in VMEM scratch across j ("arbitrary" axis); output written at the
#   last j.  Each dconv = one bf16 matmul (Cout, 9*Cin) x (9*Cin, SL) per
#   spatial strip; the 9 dilated taps are rolls (XLU) of a lane-aligned
#   zero-margin buffer + in-kernel column masks ("same" padding, no jnp.pad).
# ----------------------------------------------------------------------------
def _make_bottleneck_kernel(H, W, c, SL, d1=2, d2=3):
    HW = H * W
    assert HW % SL == 0
    n_strips = HW // SL
    dmax = max(d1, d2)
    margin = ((dmax * W + dmax + 127) // 128) * 128   # lane-aligned margin
    P = HW + 2 * margin                               # padded buffer width
    BW = SL + 2 * margin                              # per-strip base width
    use_roll = (BW % 128 == 0)                        # roll only when aligned

    def kernel(y1_ref, w1_ref, s1_ref, b1_ref, w2_ref, s2_ref, b2_ref,
               o_ref, m_sc, t_sc, pbuf, patch):
        j = pl.program_id(1)

        @pl.when(j == 0)
        def _():
            m_sc[...] = y1_ref[0].astype(jnp.float32)
            # Margins are never written afterwards -> zero them once; the
            # interior [margin, margin+HW) is fully overwritten before use.
            pbuf[:, :margin] = jnp.zeros((c, margin), jnp.float32)
            pbuf[:, margin + HW:] = jnp.zeros((c, margin), jnp.float32)

        def dconv_strips(w_ref, s_ref, b_ref, d, consume):
            # pbuf interior already holds the f32 conv input.
            w = w_ref[0]                                   # (Cout, 9*Cin) bf16
            scale, bias = s_ref[0], b_ref[0]               # (Cout, 1) f32
            # in-kernel column-validity masks (replaces (9, HW) HBM inputs)
            col = lax.broadcasted_iota(jnp.int32, (1, HW), 1) % W
            mask_l = (col >= d).astype(jnp.float32)        # col - d in-bounds
            mask_r = (col < (W - d)).astype(jnp.float32)   # col + d in-bounds
            for s in range(n_strips):          # TODO(synk): fori_loop for many strips
                p0 = s * SL
                base = pbuf[:, p0:p0 + BW]                 # one aligned load / strip
                for t in range(9):                         # static 3x3 taps
                    ky, kx = t // 3, t % 3
                    off = (ky - 1) * d * W + (kx - 1) * d  # flat tap offset
                    if off == 0:
                        tap = base[:, margin:margin + SL]
                    elif use_roll:
                        # shift on the XLU, then an aligned static slice
                        tap = pltpu.roll(base, (-off) % BW, 1)[:, margin:margin + SL]
                    else:
                        tap = pbuf[:, margin + off + p0:margin + off + p0 + SL]
                    if kx == 0:
                        tap = tap * mask_l[:, p0:p0 + SL]
                    elif kx == 2:
                        tap = tap * mask_r[:, p0:p0 + SL]
                    patch[t * c:(t + 1) * c, :] = tap.astype(jnp.bfloat16)
                # single K = 9*Cin matmul on the MXU, bf16 operands, f32 accum
                y = jnp.dot(w, patch[...], preferred_element_type=jnp.float32)
                consume(p0, y * scale + bias)              # folded BN, (c, SL)

        # ---- first dilated conv: m -> t (conv + BN, no act) ----
        pbuf[:, margin:margin + HW] = m_sc[...]
        def _store_t(p0, y):
            t_sc[:, p0:p0 + SL] = y
        dconv_strips(w1_ref, s1_ref, b1_ref, d1, _store_t)

        # ---- second dilated conv: t -> u; m = SiLU(m + u), per strip ----
        pbuf[:, margin:margin + HW] = t_sc[...]
        def _update_m(p0, y):
            mn = m_sc[:, p0:p0 + SL] + y                   # residual (f32)
            m_sc[:, p0:p0 + SL] = mn * jax.nn.sigmoid(mn)  # SiLU (f32)
        dconv_strips(w2_ref, s2_ref, b2_ref, d2, _update_m)

        @pl.when(j == pl.num_programs(1) - 1)
        def _():
            o_ref[0] = m_sc[...].astype(o_ref.dtype)

    return kernel, margin


# ----------------------------------------------------------------------------
# Host-side helpers
# ----------------------------------------------------------------------------
def _pick_tile(m, max_tile=8192):
    """Largest multiple-of-128 divisor of m (<= max_tile); full extent otherwise."""
    if m % 128 != 0:
        return m
    best, t = 128, 128
    while t <= min(m, max_tile):
        if m % t == 0:
            best = t
        t += 128
    return best


def _pick_strip(HW, c9, budget=4 << 20):
    """Largest strip length dividing HW (mult. of 128) keeping the bf16
    im2col patch (c9 * SL * 2 B) under `budget`."""
    if 2 * c9 * HW <= budget or HW % 128 != 0:
        return HW
    sl = (min(HW, budget // (2 * c9)) // 128) * 128
    while sl >= 128:
        if HW % sl == 0:
            return sl
        sl -= 128
    return HW


def _pw_weight(p):
    return p["w"][:, :, 0, 0].astype(jnp.bfloat16)             # (Cout, Cin)


def _dconv_weight(p):
    co, ci = p["w"].shape[:2]
    # (Cout, Cin, 3, 3) -> (Cout, ky, kx, Cin) -> (Cout, 9*Cin); matches the
    # patch row order (tap-major, channel-minor) used in the kernel.
    return jnp.transpose(p["w"], (0, 2, 3, 1)).reshape(co, 9 * ci).astype(jnp.bfloat16)


def _col(v):
    return v.reshape(-1, 1).astype(jnp.float32)                # (C, 1)


# ----------------------------------------------------------------------------
# Module forward (Pallas)
# ----------------------------------------------------------------------------
def dialted_c3_pallas(x_nchw, params):
    N, c1, H, W = x_nchw.shape
    HW = H * W
    c_ = params["cv1"]["w"].shape[0]
    c2 = params["cv3"]["w"].shape[0]
    nb = len(params["m"])
    TP = _pick_tile(HW)
    xf = x_nchw.reshape(N, c1, HW)                             # free reshape
    act_dt = jnp.bfloat16                                      # inter-kernel activations

    # ---- cv1 + cv2 (fused pointwise) ----------------------------------------
    pw_cost = pl.CostEstimate(
        flops=int(2 * 2 * N * HW * c1 * c_),
        transcendentals=int(2 * N * HW * c_),
        bytes_accessed=int(4 * N * HW * c1 + 2 * 2 * N * HW * c_),
    )
    y1f, y2f = pl.pallas_call(
        _cv12_kernel,
        out_shape=(jax.ShapeDtypeStruct((N, c_, HW), act_dt),
                   jax.ShapeDtypeStruct((N, c_, HW), act_dt)),
        grid=(N, HW // TP),
        in_specs=[
            pl.BlockSpec((1, c1, TP), lambda n, t: (n, 0, t)),
            pl.BlockSpec((c_, c1), lambda n, t: (0, 0)),
            pl.BlockSpec((c_, 1), lambda n, t: (0, 0)),
            pl.BlockSpec((c_, 1), lambda n, t: (0, 0)),
            pl.BlockSpec((c_, c1), lambda n, t: (0, 0)),
            pl.BlockSpec((c_, 1), lambda n, t: (0, 0)),
            pl.BlockSpec((c_, 1), lambda n, t: (0, 0)),
        ],
        out_specs=(pl.BlockSpec((1, c_, TP), lambda n, t: (n, 0, t)),
                   pl.BlockSpec((1, c_, TP), lambda n, t: (n, 0, t))),
        compiler_params=pltpu.CompilerParams(
            dimension_semantics=("parallel", "parallel")),
        cost_estimate=pw_cost,
    )(xf,
      _pw_weight(params["cv1"]), _col(params["cv1"]["scale"]), _col(params["cv1"]["bias"]),
      _pw_weight(params["cv2"]), _col(params["cv2"]["scale"]), _col(params["cv2"]["bias"]))

    # ---- all DilatedBottlenecks in one fused kernel --------------------------
    w1_all = jnp.stack([_dconv_weight(bp["cv1"]) for bp in params["m"]])   # (nb, c_, 9c_)
    w2_all = jnp.stack([_dconv_weight(bp["cv2"]) for bp in params["m"]])
    s1_all = jnp.stack([_col(bp["cv1"]["scale"]) for bp in params["m"]])   # (nb, c_, 1)
    b1_all = jnp.stack([_col(bp["cv1"]["bias"]) for bp in params["m"]])
    s2_all = jnp.stack([_col(bp["cv2"]["scale"]) for bp in params["m"]])
    b2_all = jnp.stack([_col(bp["cv2"]["bias"]) for bp in params["m"]])

    SL = _pick_strip(HW, 9 * c_)
    bkernel, margin = _make_bottleneck_kernel(H, W, c_, SL, d1=2, d2=3)
    P = HW + 2 * margin

    # explicit scoped-VMEM budget: scratch + double-buffered blocks + headroom
    scratch_bytes = 2 * c_ * HW * 4 + c_ * P * 4 + 9 * c_ * SL * 2
    block_bytes = 2 * 2 * c_ * HW * 2 + 2 * 2 * (9 * c_ * c_ * 2 + 2 * c_ * 4)
    vmem_limit = int(min(127 << 20, max(32 << 20, 2 * (scratch_bytes + block_bytes))))

    bn_cost = pl.CostEstimate(
        flops=int(N * nb * 2 * (2 * 9 * c_ * c_ * HW)),
        transcendentals=int(N * nb * c_ * HW),
        bytes_accessed=int(2 * 2 * N * c_ * HW + nb * 2 * 2 * 9 * c_ * c_),
    )
    m_out = pl.pallas_call(
        bkernel,
        out_shape=jax.ShapeDtypeStruct((N, c_, HW), act_dt),
        grid=(N, nb),
        in_specs=[
            pl.BlockSpec((1, c_, HW), lambda n, j: (n, 0, 0)),
            pl.BlockSpec((1, c_, 9 * c_), lambda n, j: (j, 0, 0)),
            pl.BlockSpec((1, c_, 1), lambda n, j: (j, 0, 0)),
            pl.BlockSpec((1, c_, 1), lambda n, j: (j, 0, 0)),
            pl.BlockSpec((1, c_, 9 * c_), lambda n, j: (j, 0, 0)),
            pl.BlockSpec((1, c_, 1), lambda n, j: (j, 0, 0)),
            pl.BlockSpec((1, c_, 1), lambda n, j: (j, 0, 0)),
        ],
        out_specs=pl.BlockSpec((1, c_, HW), lambda n, j: (n, 0, 0)),
        scratch_shapes=[
            pltpu.VMEM((c_, HW), jnp.float32),                 # running activation m
            pltpu.VMEM((c_, HW), jnp.float32),                 # t = BN(dconv1(m))
            pltpu.VMEM((c_, P), jnp.float32),                  # zero-margin padded source
            pltpu.VMEM((9 * c_, SL), jnp.bfloat16),            # bf16 im2col patch (1 strip)
        ],
        compiler_params=pltpu.CompilerParams(
            dimension_semantics=("parallel", "arbitrary"),     # j must stay "arbitrary"
            vmem_limit_bytes=vmem_limit),
        cost_estimate=bn_cost,
    )(y1f, w1_all, s1_all, b1_all, w2_all, s2_all, b2_all)

    # ---- concat + cv3 (fused) ------------------------------------------------
    w3 = params["cv3"]["w"][:, :, 0, 0]                        # (c2, 2c_)
    w3a = w3[:, :c_].astype(jnp.bfloat16)                      # applies to m
    w3b = w3[:, c_:].astype(jnp.bfloat16)                      # applies to y2
    cv3_cost = pl.CostEstimate(
        flops=int(2 * 2 * N * HW * c_ * c2),
        transcendentals=int(N * HW * c2),
        bytes_accessed=int(2 * 2 * N * c_ * HW + 4 * N * c2 * HW),
    )
    out_f = pl.pallas_call(
        _cv3_kernel,
        out_shape=jax.ShapeDtypeStruct((N, c2, HW), jnp.float32),
        grid=(N, HW // TP),
        in_specs=[
            pl.BlockSpec((1, c_, TP), lambda n, t: (n, 0, t)),
            pl.BlockSpec((1, c_, TP), lambda n, t: (n, 0, t)),
            pl.BlockSpec((c2, c_), lambda n, t: (0, 0)),
            pl.BlockSpec((c2, c_), lambda n, t: (0, 0)),
            pl.BlockSpec((c2, 1), lambda n, t: (0, 0)),
            pl.BlockSpec((c2, 1), lambda n, t: (0, 0)),
        ],
        out_specs=pl.BlockSpec((1, c2, TP), lambda n, t: (n, 0, t)),
        compiler_params=pltpu.CompilerParams(
            dimension_semantics=("parallel", "parallel")),
        cost_estimate=cv3_cost,
    )(m_out, y2f, w3a, w3b, _col(params["cv3"]["scale"]), _col(params["cv3"]["bias"]))

    return out_f.reshape(N, c2, H, W)


# ----------------------------------------------------------------------------
# Parameter setup (deterministic, synthetic) with folded inference-mode BN
# ----------------------------------------------------------------------------
def init_conv_bn(key, cin, cout, k):
    kw, kg, kb, km, kv = jax.random.split(key, 5)
    w = jax.random.normal(kw, (cout, cin, k, k), jnp.float32)
    w = w * (1.0 / (cin * k * k) ** 0.5)
    gamma = 1.0 + 0.1 * jax.random.normal(kg, (cout,), jnp.float32)
    beta = 0.1 * jax.random.normal(kb, (cout,), jnp.float32)
    mean = 0.1 * jax.random.normal(km, (cout,), jnp.float32)
    var = 1.0 + 0.2 * jax.random.uniform(kv, (cout,), jnp.float32)
    eps = 1e-5                                                 # nn.BatchNorm2d default
    scale = gamma / jnp.sqrt(var + eps)
    bias = beta - mean * scale
    return {"w": w, "scale": scale, "bias": bias}


# ----------------------------------------------------------------------------
# Pure-JAX reference (lax.conv) for validation.  conv_dtype=bf16 reproduces the
# kernel's "bf16 matmul operands + f32 accumulation" numerics and additionally
# emulates the bf16 storage of y1 / y2 / m between kernels.
# ----------------------------------------------------------------------------
def dialted_c3_ref(x_nchw, params, conv_dtype=jnp.float32):
    q = ((lambda v: v.astype(jnp.bfloat16).astype(jnp.float32))
         if conv_dtype == jnp.bfloat16 else (lambda v: v))

    def cbn(x, p, k, d):
        pad = (k // 2) * d
        w = jnp.transpose(p["w"], (2, 3, 1, 0)).astype(conv_dtype)
        y = jax.lax.conv_general_dilated(
            x.astype(conv_dtype), w, (1, 1), [(pad, pad), (pad, pad)],
            rhs_dilation=(d, d), dimension_numbers=("NHWC", "HWIO", "NHWC"),
            preferred_element_type=jnp.float32)
        return y * p["scale"].reshape(1, 1, 1, -1) + p["bias"].reshape(1, 1, 1, -1)

    silu = lambda v: v * jax.nn.sigmoid(v)
    x = jnp.transpose(x_nchw, (0, 2, 3, 1))
    y1 = q(silu(cbn(x, params["cv1"], 1, 1)))
    y2 = q(silu(cbn(x, params["cv2"], 1, 1)))
    m = y1
    for bp in params["m"]:
        t = cbn(m, bp["cv1"], 3, 2)
        m = silu(m + cbn(t, bp["cv2"], 3, 3))
    m = q(m)
    out = silu(cbn(jnp.concatenate([m, y2], -1), params["cv3"], 1, 1))
    return jnp.transpose(out, (0, 3, 1, 2))


if __name__ == "__main__":
    key = jax.random.PRNGKey(0)
    N, c1, c2, H, W = 2, 8, 8, 16, 16
    e = 0.5
    c_ = int(c1 * e)                                           # hidden channels = 4

    keys = jax.random.split(key, 12)
    params = {
        "cv1": init_conv_bn(keys[0], c1, c_, 1),
        "cv2": init_conv_bn(keys[1], c1, c_, 1),
        "cv3": init_conv_bn(keys[2], 2 * c_, c2, 1),
        "m": [
            {"cv1": init_conv_bn(keys[3 + 2 * i], c_, c_, 3),
             "cv2": init_conv_bn(keys[4 + 2 * i], c_, c_, 3)}
            for i in range(4)
        ],
    }
    x = jax.random.normal(keys[11], (N, c1, H, W), jnp.float32)

    out = jax.jit(dialted_c3_pallas)(x, params)
    out = jax.block_until_ready(out)
    assert out.shape == (N, c2, H, W), out.shape

    # tight check against a reference that uses the same bf16-operand /
    # f32-accumulation matmuls and the same bf16 activation storage
    ref_bf16 = dialted_c3_ref(x, params, conv_dtype=jnp.bfloat16)
    err_bf16 = float(jnp.max(jnp.abs(out - ref_bf16)))
    assert err_bf16 < 6e-2, f"mismatch vs bf16-matmul reference: {err_bf16}"

    # loose sanity check against the full-f32 reference (bf16 quantization noise)
    ref_f32 = dialted_c3_ref(x, params, conv_dtype=jnp.float32)
    err_f32 = float(jnp.max(jnp.abs(out - ref_f32)))
    assert err_f32 < 3e-1, f"mismatch vs f32 reference: {err_f32}"

    print("KERNEL_OK")
</pallas_src>

<mosaic_0001>
module attributes {stable_mosaic.version = 11 : i64} {
  func.func @_cv3_kernel(%arg0: i32, %arg1: i32, %arg2: memref<1x4x256xbf16, #tpu.memory_space<vmem>>, %arg3: memref<1x4x256xbf16, #tpu.memory_space<vmem>>, %arg4: memref<8x4xbf16, #tpu.memory_space<vmem>>, %arg5: memref<8x4xbf16, #tpu.memory_space<vmem>>, %arg6: memref<8x1xf32, #tpu.memory_space<vmem>>, %arg7: memref<8x1xf32, #tpu.memory_space<vmem>>, %arg8: memref<1x8x256xf32, #tpu.memory_space<vmem>>) attributes {dimension_semantics = [#tpu.dimension_semantics<parallel>, #tpu.dimension_semantics<parallel>], iteration_bounds = array<i64: 2, 1>, scalar_prefetch = 0 : i64, scratch_operands = 0 : i64, tpu.core_type = #tpu.core_type<tc>, window_params = [{transform_indices = @transform_0, window_bounds = array<i64: 1, 4, 256>}, {transform_indices = @transform_1, window_bounds = array<i64: 1, 4, 256>}, {pipeline_mode = #tpu.pipeline_mode<synchronous>, transform_indices = @transform_2, window_bounds = array<i64: 8, 4>}, {pipeline_mode = #tpu.pipeline_mode<synchronous>, transform_indices = @transform_3, window_bounds = array<i64: 8, 4>}, {pipeline_mode = #tpu.pipeline_mode<synchronous>, transform_indices = @transform_4, window_bounds = array<i64: 8, 1>}, {pipeline_mode = #tpu.pipeline_mode<synchronous>, transform_indices = @transform_5, window_bounds = array<i64: 8, 1>}, {transform_indices = @transform_6, window_bounds = array<i64: 1, 8, 256>}]} {
    %c0 = arith.constant 0 : index
    %c0_0 = arith.constant 0 : index
    %c0_1 = arith.constant 0 : index
    %0 = vector.load %arg2[%c0, %c0_0, %c0_1] : memref<1x4x256xbf16, #tpu.memory_space<vmem>>, vector<1x4x256xbf16>
    %1 = vector.shape_cast %0 : vector<1x4x256xbf16> to vector<4x256xbf16>
    %c0_2 = arith.constant 0 : index
    %c0_3 = arith.constant 0 : index
    %c0_4 = arith.constant 0 : index
    %2 = vector.load %arg3[%c0_2, %c0_3, %c0_4] : memref<1x4x256xbf16, #tpu.memory_space<vmem>>, vector<1x4x256xbf16>
    %3 = vector.shape_cast %2 : vector<1x4x256xbf16> to vector<4x256xbf16>
    %c0_5 = arith.constant 0 : index
    %c0_6 = arith.constant 0 : index
    %4 = vector.load %arg4[%c0_5, %c0_6] : memref<8x4xbf16, #tpu.memory_space<vmem>>, vector<8x4xbf16>
    %cst = arith.constant dense<0.000000e+00> : vector<8x256xf32>
    %5 = tpu.matmul %4, %1, %cst {dimension_numbers = #tpu.dot_dimension_numbers<[1], [0], [0], [1], [0, 0, 1, 1], [], []>} : vector<8x4xbf16>, vector<4x256xbf16>, vector<8x256xf32> -> vector<8x256xf32>
    %c0_7 = arith.constant 0 : index
    %c0_8 = arith.constant 0 : index
    %6 = vector.load %arg5[%c0_7, %c0_8] : memref<8x4xbf16, #tpu.memory_space<vmem>>, vector<8x4xbf16>
    %cst_9 = arith.constant dense<0.000000e+00> : vector<8x256xf32>
    %7 = tpu.matmul %6, %3, %cst_9 {dimension_numbers = #tpu.dot_dimension_numbers<[1], [0], [0], [1], [0, 0, 1, 1], [], []>} : vector<8x4xbf16>, vector<4x256xbf16>, vector<8x256xf32> -> vector<8x256xf32>
    %8 = arith.addf %5, %7 : vector<8x256xf32>
    %c0_10 = arith.constant 0 : index
    %c0_11 = arith.constant 0 : index
    %9 = vector.load %arg6[%c0_10, %c0_11] : memref<8x1xf32, #tpu.memory_space<vmem>>, vector<8x1xf32>
    %10 = vector.broadcast %9 : vector<8x1xf32> to vector<8x256xf32>
    %11 = arith.mulf %8, %10 : vector<8x256xf32>
    %c0_12 = arith.constant 0 : index
    %c0_13 = arith.constant 0 : index
    %12 = vector.load %arg7[%c0_12, %c0_13] : memref<8x1xf32, #tpu.memory_space<vmem>>, vector<8x1xf32>
    %13 = vector.broadcast %12 : vector<8x1xf32> to vector<8x256xf32>
    %14 = arith.addf %11, %13 : vector<8x256xf32>
    %15 = arith.negf %14 : vector<8x256xf32>
    %16 = math.exp %15 : vector<8x256xf32>
    %cst_14 = arith.constant 1.000000e+00 : f32
    %17 = vector.broadcast %cst_14 : f32 to vector<8x256xf32>
    %18 = arith.addf %17, %16 : vector<8x256xf32>
    %19 = arith.divf %17, %18 : vector<8x256xf32>
    %20 = arith.mulf %14, %19 : vector<8x256xf32>
    %c0_15 = arith.constant 0 : index
    %c0_16 = arith.constant 0 : index
    %c0_17 = arith.constant 0 : index
    %21 = vector.load %arg8[%c0_15, %c0_16, %c0_17] : memref<1x8x256xf32, #tpu.memory_space<vmem>>, vector<1x8x256xf32>
    %22 = vector.shape_cast %21 : vector<1x8x256xf32> to vector<8x256xf32>
    %23 = vector.shape_cast %20 : vector<8x256xf32> to vector<1x8x256xf32>
    tpu.vector_store %arg8[%c0_15, %c0_16, %c0_17], %23 {strides = array<i32>} : memref<1x8x256xf32, #tpu.memory_space<vmem>>, vector<1x8x256xf32>,
    return
  }
  func.func @transform_0(%arg0: i32, %arg1: i32) -> (i32, i32, i32) {
    %c0_i32 = arith.constant 0 : i32
    %c0_i32_0 = arith.constant 0 : i32
    return %arg0, %c0_i32, %arg1 : i32, i32, i32
  }
  func.func @transform_1(%arg0: i32, %arg1: i32) -> (i32, i32, i32) {
    %c0_i32 = arith.constant 0 : i32
    %c0_i32_0 = arith.constant 0 : i32
    return %arg0, %c0_i32, %arg1 : i32, i32, i32
  }
  func.func @transform_2(%arg0: i32, %arg1: i32) -> (i32, i32) {
    %c0_i32 = arith.constant 0 : i32
    %c0_i32_0 = arith.constant 0 : i32
    %c0_i32_1 = arith.constant 0 : i32
    return %c0_i32, %c0_i32_0 : i32, i32
  }
  func.func @transform_3(%arg0: i32, %arg1: i32) -> (i32, i32) {
    %c0_i32 = arith.constant 0 : i32
    %c0_i32_0 = arith.constant 0 : i32
    %c0_i32_1 = arith.constant 0 : i32
    return %c0_i32, %c0_i32_0 : i32, i32
  }
  func.func @transform_4(%arg0: i32, %arg1: i32) -> (i32, i32) {
    %c0_i32 = arith.constant 0 : i32
    %c0_i32_0 = arith.constant 0 : i32
    %c0_i32_1 = arith.constant 0 : i32
    return %c0_i32, %c0_i32_0 : i32, i32
  }
  func.func @transform_5(%arg0: i32, %arg1: i32) -> (i32, i32) {
    %c0_i32 = arith.constant 0 : i32
    %c0_i32_0 = arith.constant 0 : i32
    %c0_i32_1 = arith.constant 0 : i32
    return %c0_i32, %c0_i32_0 : i32, i32
  }
  func.func @transform_6(%arg0: i32, %arg1: i32) -> (i32, i32, i32) {
    %c0_i32 = arith.constant 0 : i32
    %c0_i32_0 = arith.constant 0 : i32
    return %arg0, %c0_i32, %arg1 : i32, i32, i32
  }
}

module attributes {stable_mosaic.version = 11 : i64} {
  func.func @_cv12_kernel(%arg0: i32, %arg1: i32, %arg2: memref<1x8x256xf32, #tpu.memory_space<vmem>>, %arg3: memref<4x8xbf16, #tpu.memory_space<vmem>>, %arg4: memref<4x1xf32, #tpu.memory_space<vmem>>, %arg5: memref<4x1xf32, #tpu.memory_space<vmem>>, %arg6: memref<4x8xbf16, #tpu.memory_space<vmem>>, %arg7: memref<4x1xf32, #tpu.memory_space<vmem>>, %arg8: memref<4x1xf32, #tpu.memory_space<vmem>>, %arg9: memref<1x4x256xbf16, #tpu.memory_space<vmem>>, %arg10: memref<1x4x256xbf16, #tpu.memory_space<vmem>>) attributes {dimension_semantics = [#tpu.dimension_semantics<parallel>, #tpu.dimension_semantics<parallel>], iteration_bounds = array<i64: 2, 1>, scalar_prefetch = 0 : i64, scratch_operands = 0 : i64, tpu.core_type = #tpu.core_type<tc>, window_params = [{transform_indices = @transform_0, window_bounds = array<i64: 1, 8, 256>}, {pipeline_mode = #tpu.pipeline_mode<synchronous>, transform_indices = @transform_1, window_bounds = array<i64: 4, 8>}, {pipeline_mode = #tpu.pipeline_mode<synchronous>, transform_indices = @transform_2, window_bounds = array<i64: 4, 1>}, {pipeline_mode = #tpu.pipeline_mode<synchronous>, transform_indices = @transform_3, window_bounds = array<i64: 4, 1>}, {pipeline_mode = #tpu.pipeline_mode<synchronous>, transform_indices = @transform_4, window_bounds = array<i64: 4, 8>}, {pipeline_mode = #tpu.pipeline_mode<synchronous>, transform_indices = @transform_5, window_bounds = array<i64: 4, 1>}, {pipeline_mode = #tpu.pipeline_mode<synchronous>, transform_indices = @transform_6, window_bounds = array<i64: 4, 1>}, {transform_indices = @transform_7, window_bounds = array<i64: 1, 4, 256>}, {transform_indices = @transform_8, window_bounds = array<i64: 1, 4, 256>}]} {
    %c0 = arith.constant 0 : index
    %c0_0 = arith.constant 0 : index
    %c0_1 = arith.constant 0 : index
    %0 = vector.load %arg2[%c0, %c0_0, %c0_1] : memref<1x8x256xf32, #tpu.memory_space<vmem>>, vector<1x8x256xf32>
    %1 = vector.shape_cast %0 : vector<1x8x256xf32> to vector<8x256xf32>
    %2 = arith.truncf %1 : vector<8x256xf32> to vector<8x256xbf16>
    %c0_2 = arith.constant 0 : index
    %c0_3 = arith.constant 0 : index
    %3 = vector.load %arg3[%c0_2, %c0_3] : memref<4x8xbf16, #tpu.memory_space<vmem>>, vector<4x8xbf16>
    %cst = arith.constant dense<0.000000e+00> : vector<4x256xf32>
    %4 = tpu.matmul %3, %2, %cst {dimension_numbers = #tpu.dot_dimension_numbers<[1], [0], [0], [1], [0, 0, 1, 1], [], []>} : vector<4x8xbf16>, vector<8x256xbf16>, vector<4x256xf32> -> vector<4x256xf32>
    %c0_4 = arith.constant 0 : index
    %c0_5 = arith.constant 0 : index
    %5 = vector.load %arg4[%c0_4, %c0_5] : memref<4x1xf32, #tpu.memory_space<vmem>>, vector<4x1xf32>
    %6 = vector.broadcast %5 : vector<4x1xf32> to vector<4x256xf32>
    %7 = arith.mulf %4, %6 : vector<4x256xf32>
    %c0_6 = arith.constant 0 : index
    %c0_7 = arith.constant 0 : index
    %8 = vector.load %arg5[%c0_6, %c0_7] : memref<4x1xf32, #tpu.memory_space<vmem>>, vector<4x1xf32>
    %9 = vector.broadcast %8 : vector<4x1xf32> to vector<4x256xf32>
    %10 = arith.addf %7, %9 : vector<4x256xf32>
    %11 = arith.negf %10 : vector<4x256xf32>
    %12 = math.exp %11 : vector<4x256xf32>
    %cst_8 = arith.constant 1.000000e+00 : f32
    %13 = vector.broadcast %cst_8 : f32 to vector<4x256xf32>
    %14 = arith.addf %13, %12 : vector<4x256xf32>
    %15 = arith.divf %13, %14 : vector<4x256xf32>
    %16 = arith.mulf %10, %15 : vector<4x256xf32>
    %17 = arith.truncf %16 : vector<4x256xf32> to vector<4x256xbf16>
    %c0_9 = arith.constant 0 : index
    %c0_10 = arith.constant 0 : index
    %c0_11 = arith.constant 0 : index
    %18 = vector.load %arg9[%c0_9, %c0_10, %c0_11] : memref<1x4x256xbf16, #tpu.memory_space<vmem>>, vector<1x4x256xbf16>
    %19 = vector.shape_cast %18 : vector<1x4x256xbf16> to vector<4x256xbf16>
    %20 = vector.shape_cast %17 : vector<4x256xbf16> to vector<1x4x256xbf16>
    tpu.vector_store %arg9[%c0_9, %c0_10, %c0_11], %20 {strides = array<i32>} : memref<1x4x256xbf16, #tpu.memory_space<vmem>>, vector<1x4x256xbf16>,
    %c0_12 = arith.constant 0 : index
    %c0_13 = arith.constant 0 : index
    %21 = vector.load %arg6[%c0_12, %c0_13] : memref<4x8xbf16, #tpu.memory_space<vmem>>, vector<4x8xbf16>
    %cst_14 = arith.constant dense<0.000000e+00> : vector<4x256xf32>
    %22 = tpu.matmul %21, %2, %cst_14 {dimension_numbers = #tpu.dot_dimension_numbers<[1], [0], [0], [1], [0, 0, 1, 1], [], []>} : vector<4x8xbf16>, vector<8x256xbf16>, vector<4x256xf32> -> vector<4x256xf32>
    %c0_15 = arith.constant 0 : index
    %c0_16 = arith.constant 0 : index
    %23 = vector.load %arg7[%c0_15, %c0_16] : memref<4x1xf32, #tpu.memory_space<vmem>>, vector<4x1xf32>
    %24 = vector.broadcast %23 : vector<4x1xf32> to vector<4x256xf32>
    %25 = arith.mulf %22, %24 : vector<4x256xf32>
    %c0_17 = arith.constant 0 : index
    %c0_18 = arith.constant 0 : index
    %26 = vector.load %arg8[%c0_17, %c0_18] : memref<4x1xf32, #tpu.memory_space<vmem>>, vector<4x1xf32>
    %27 = vector.broadcast %26 : vector<4x1xf32> to vector<4x256xf32>
    %28 = arith.addf %25, %27 : vector<4x256xf32>
    %29 = arith.negf %28 : vector<4x256xf32>
    %30 = math.exp %29 : vector<4x256xf32>
    %cst_19 = arith.constant 1.000000e+00 : f32
    %31 = vector.broadcast %cst_19 : f32 to vector<4x256xf32>
    %32 = arith.addf %31, %30 : vector<4x256xf32>
    %33 = arith.divf %31, %32 : vector<4x256xf32>
    %34 = arith.mulf %28, %33 : vector<4x256xf32>
    %35 = arith.truncf %34 : vector<4x256xf32> to vector<4x256xbf16>
    %c0_20 = arith.constant 0 : index
    %c0_21 = arith.constant 0 : index
    %c0_22 = arith.constant 0 : index
    %36 = vector.load %arg10[%c0_20, %c0_21, %c0_22] : memref<1x4x256xbf16, #tpu.memory_space<vmem>>, vector<1x4x256xbf16>
    %37 = vector.shape_cast %36 : vector<1x4x256xbf16> to vector<4x256xbf16>
    %38 = vector.shape_cast %35 : vector<4x256xbf16> to vector<1x4x256xbf16>
    tpu.vector_store %arg10[%c0_20, %c0_21, %c0_22], %38 {strides = array<i32>} : memref<1x4x256xbf16, #tpu.memory_space<vmem>>, vector<1x4x256xbf16>,
    return
  }
  func.func @transform_0(%arg0: i32, %arg1: i32) -> (i32, i32, i32) {
    %c0_i32 = arith.constant 0 : i32
    %c0_i32_0 = arith.constant 0 : i32
    return %arg0, %c0_i32, %arg1 : i32, i32, i32
  }
  func.func @transform_1(%arg0: i32, %arg1: i32) -> (i32, i32) {
    %c0_i32 = arith.constant 0 : i32
    %c0_i32_0 = arith.constant 0 : i32
    %c0_i32_1 = arith.constant 0 : i32
    return %c0_i32, %c0_i32_0 : i32, i32
  }
  func.func @transform_2(%arg0: i32, %arg1: i32) -> (i32, i32) {
    %c0_i32 = arith.constant 0 : i32
    %c0_i32_0 = arith.constant 0 : i32
    %c0_i32_1 = arith.constant 0 : i32
    return %c0_i32, %c0_i32_0 : i32, i32
  }
  func.func @transform_3(%arg0: i32, %arg1: i32) -> (i32, i32) {
    %c0_i32 = arith.constant 0 : i32
    %c0_i32_0 = arith.constant 0 : i32
    %c0_i32_1 = arith.constant 0 : i32
    return %c0_i32, %c0_i32_0 : i32, i32
  }
  func.func @transform_4(%arg0: i32, %arg1: i32) -> (i32, i32) {
    %c0_i32 = arith.constant 0 : i32
    %c0_i32_0 = arith.constant 0 : i32
    %c0_i32_1 = arith.constant 0 : i32
    return %c0_i32, %c0_i32_0 : i32, i32
  }
  func.func @transform_5(%arg0: i32, %arg1: i32) -> (i32, i32) {
    %c0_i32 = arith.constant 0 : i32
    %c0_i32_0 = arith.constant 0 : i32
    %c0_i32_1 = arith.constant 0 : i32
    return %c0_i32, %c0_i32_0 : i32, i32
  }
  func.func @transform_6(%arg0: i32, %arg1: i32) -> (i32, i32) {
    %c0_i32 = arith.constant 0 : i32
    %c0_i32_0 = arith.constant 0 : i32
    %c0_i32_1 = arith.constant 0 : i32
    return %c0_i32, %c0_i32_0 : i32, i32
  }
  func.func @transform_7(%arg0: i32, %arg1: i32) -> (i32, i32, i32) {
    %c0_i32 = arith.constant 0 : i32
    %c0_i32_0 = arith.constant 0 : i32
    return %arg0, %c0_i32, %arg1 : i32, i32, i32
  }
  func.func @transform_8(%arg0: i32, %arg1: i32) -> (i32, i32, i32) {
    %c0_i32 = arith.constant 0 : i32
    %c0_i32_0 = arith.constant 0 : i32
    return %arg0, %c0_i32, %arg1 : i32, i32, i32
  }
}

module attributes {stable_mosaic.version = 11 : i64} {
  func.func @kernel(%arg0: i32, %arg1: i32, %arg2: memref<1x4x256xbf16, #tpu.memory_space<vmem>>, %arg3: memref<1x4x36xbf16, #tpu.memory_space<vmem>>, %arg4: memref<1x4x1xf32, #tpu.memory_space<vmem>>, %arg5: memref<1x4x1xf32, #tpu.memory_space<vmem>>, %arg6: memref<1x4x36xbf16, #tpu.memory_space<vmem>>, %arg7: memref<1x4x1xf32, #tpu.memory_space<vmem>>, %arg8: memref<1x4x1xf32, #tpu.memory_space<vmem>>, %arg9: memref<1x4x256xbf16, #tpu.memory_space<vmem>>, %arg10: memref<4x256xf32, #tpu.memory_space<vmem>>, %arg11: memref<4x256xf32, #tpu.memory_space<vmem>>, %arg12: memref<4x512xf32, #tpu.memory_space<vmem>>, %arg13: memref<36x256xbf16, #tpu.memory_space<vmem>>) attributes {dimension_semantics = [#tpu.dimension_semantics<parallel>, #tpu.dimension_semantics<arbitrary>], iteration_bounds = array<i64: 2, 4>, scalar_prefetch = 0 : i64, scratch_operands = 4 : i64, tpu.core_type = #tpu.core_type<tc>, window_params = [{transform_indices = @transform_0, window_bounds = array<i64: 1, 4, 256>}, {transform_indices = @transform_1, window_bounds = array<i64: 1, 4, 36>}, {transform_indices = @transform_2, window_bounds = array<i64: 1, 4, 1>}, {transform_indices = @transform_3, window_bounds = array<i64: 1, 4, 1>}, {transform_indices = @transform_4, window_bounds = array<i64: 1, 4, 36>}, {transform_indices = @transform_5, window_bounds = array<i64: 1, 4, 1>}, {transform_indices = @transform_6, window_bounds = array<i64: 1, 4, 1>}, {transform_indices = @transform_7, window_bounds = array<i64: 1, 4, 256>}]} {
    %c0_i32 = arith.constant 0 : i32
    %0 = arith.cmpi eq, %arg1, %c0_i32 : i32
    %1 = arith.extui %0 : i1 to i32
    %c0_i32_0 = arith.constant 0 : i32
    %2 = arith.cmpi ne, %1, %c0_i32_0 : i32
    scf.if %2 {
      %c0_83 = arith.constant 0 : index
      %c0_84 = arith.constant 0 : index
      %c0_85 = arith.constant 0 : index
      %190 = vector.load %arg2[%c0_83, %c0_84, %c0_85] : memref<1x4x256xbf16, #tpu.memory_space<vmem>>, vector<1x4x256xbf16>
      %191 = vector.shape_cast %190 : vector<1x4x256xbf16> to vector<4x256xbf16>
      %192 = arith.extf %191 : vector<4x256xbf16> to vector<4x256xf32>
      %c0_86 = arith.constant 0 : index
      %c0_87 = arith.constant 0 : index
      %193 = vector.load %arg10[%c0_86, %c0_87] : memref<4x256xf32, #tpu.memory_space<vmem>>, vector<4x256xf32>
      tpu.vector_store %arg10[%c0_86, %c0_87], %192 {strides = array<i32>} : memref<4x256xf32, #tpu.memory_space<vmem>>, vector<4x256xf32>,
      %cst_88 = arith.constant 0.000000e+00 : f32
      %194 = vector.broadcast %cst_88 : f32 to vector<4x128xf32>
      %c0_89 = arith.constant 0 : index
      %c0_90 = arith.constant 0 : index
      %195 = vector.load %arg12[%c0_89, %c0_90] : memref<4x512xf32, #tpu.memory_space<vmem>>, vector<4x128xf32>
      tpu.vector_store %arg12[%c0_89, %c0_90], %194 {strides = array<i32>} : memref<4x512xf32, #tpu.memory_space<vmem>>, vector<4x128xf32>,
      %cst_91 = arith.constant 0.000000e+00 : f32
      %196 = vector.broadcast %cst_91 : f32 to vector<4x128xf32>
      %c0_92 = arith.constant 0 : index
      %c384 = arith.constant 384 : index
      %197 = vector.load %arg12[%c0_92, %c384] : memref<4x512xf32, #tpu.memory_space<vmem>>, vector<4x128xf32>
      tpu.vector_store %arg12[%c0_92, %c384], %196 {strides = array<i32>} : memref<4x512xf32, #tpu.memory_space<vmem>>, vector<4x128xf32>,
    } else {
    }
    %c0 = arith.constant 0 : index
    %c0_1 = arith.constant 0 : index
    %3 = vector.load %arg10[%c0, %c0_1] : memref<4x256xf32, #tpu.memory_space<vmem>>, vector<4x256xf32>
    %c0_2 = arith.constant 0 : index
    %c128 = arith.constant 128 : index
    %4 = vector.load %arg12[%c0_2, %c128] : memref<4x512xf32, #tpu.memory_space<vmem>>, vector<4x256xf32>
    tpu.vector_store %arg12[%c0_2, %c128], %3 {strides = array<i32>} : memref<4x512xf32, #tpu.memory_space<vmem>>, vector<4x256xf32>,
    %c0_3 = arith.constant 0 : index
    %c0_4 = arith.constant 0 : index
    %c0_5 = arith.constant 0 : index
    %5 = vector.load %arg3[%c0_3, %c0_4, %c0_5] : memref<1x4x36xbf16, #tpu.memory_space<vmem>>, vector<1x4x36xbf16>
    %6 = vector.shape_cast %5 : vector<1x4x36xbf16> to vector<4x36xbf16>
    %c0_6 = arith.constant 0 : index
    %c0_7 = arith.constant 0 : index
    %c0_8 = arith.constant 0 : index
    %7 = vector.load %arg4[%c0_6, %c0_7, %c0_8] : memref<1x4x1xf32, #tpu.memory_space<vmem>>, vector<1x4x1xf32>
    %8 = vector.shape_cast %7 : vector<1x4x1xf32> to vector<4x1xf32>
    %c0_9 = arith.constant 0 : index
    %c0_10 = arith.constant 0 : index
    %c0_11 = arith.constant 0 : index
    %9 = vector.load %arg5[%c0_9, %c0_10, %c0_11] : memref<1x4x1xf32, #tpu.memory_space<vmem>>, vector<1x4x1xf32>
    %10 = vector.shape_cast %9 : vector<1x4x1xf32> to vector<4x1xf32>
    %11 = tpu.iota {dimensions = array<i32: 1>} : vector<1x256xi32>
    %c16_i32 = arith.constant 16 : i32
    %c0_i32_12 = arith.constant 0 : i32
    %12 = arith.cmpi eq, %c16_i32, %c0_i32_12 : i32
    %c1_i32 = arith.constant 1 : i32
    %13 = arith.select %12, %c1_i32, %c16_i32 : i32
    %14 = vector.broadcast %13 : i32 to vector<1x256xi32>
    %15 = arith.remsi %11, %14 : vector<1x256xi32>
    %c0_i32_13 = arith.constant 0 : i32
    %16 = vector.broadcast %c0_i32_13 : i32 to vector<1x256xi32>
    %17 = arith.cmpi ne, %15, %16 : vector<1x256xi32>
    %c0_i32_14 = arith.constant 0 : i32
    %18 = vector.broadcast %c0_i32_14 : i32 to vector<1x256xi32>
    %19 = arith.cmpi slt, %15, %18 : vector<1x256xi32>
    %c0_i32_15 = arith.constant 0 : i32
    %20 = arith.cmpi slt, %13, %c0_i32_15 : i32
    %21 = vector.broadcast %20 : i1 to vector<1x256xi1>
    %22 = vector.broadcast %21 : vector<1x256xi1> to vector<1x256xi1>
    %23 = arith.xori %19, %22 : vector<1x256xi1>
    %24 = arith.andi %23, %17 : vector<1x256xi1>
    %25 = vector.broadcast %13 : i32 to vector<1x256xi32>
    %26 = arith.addi %15, %25 : vector<1x256xi32>
    %27 = arith.select %24, %26, %15 : vector<1x256xi1>, vector<1x256xi32>
    %c2_i32 = arith.constant 2 : i32
    %28 = vector.broadcast %c2_i32 : i32 to vector<1x256xi32>
    %29 = arith.cmpi sge, %27, %28 : vector<1x256xi32>
    %30 = arith.extui %29 : vector<1x256xi1> to vector<1x256xi32>
    %31 = arith.sitofp %30 : vector<1x256xi32> to vector<1x256xf32>
    %c14_i32 = arith.constant 14 : i32
    %32 = vector.broadcast %c14_i32 : i32 to vector<1x256xi32>
    %33 = arith.cmpi slt, %27, %32 : vector<1x256xi32>
    %34 = arith.extui %33 : vector<1x256xi1> to vector<1x256xi32>
    %35 = arith.sitofp %34 : vector<1x256xi32> to vector<1x256xf32>
    %c0_16 = arith.constant 0 : index
    %c0_17 = arith.constant 0 : index
    %36 = vector.load %arg12[%c0_16, %c0_17] : memref<4x512xf32, #tpu.memory_space<vmem>>, vector<4x512xf32>
    %c34_i32 = arith.constant 34 : i32
    %37 = tpu.dynamic_rotate %36 by %c34_i32 dim 1 : vector<4x512xf32>, i32 -> vector<4x512xf32>
    %38 = vector.extract_strided_slice %37 {offsets = [0, 128], sizes = [4, 256], strides = [1, 1]} : vector<4x512xf32> to vector<4x256xf32>
    %39 = vector.broadcast %31 : vector<1x256xf32> to vector<4x256xf32>
    %40 = arith.mulf %38, %39 : vector<4x256xf32>
    %41 = arith.truncf %40 : vector<4x256xf32> to vector<4x256xbf16>
    %c0_18 = arith.constant 0 : index
    %c0_19 = arith.constant 0 : index
    %42 = vector.load %arg13[%c0_18, %c0_19] : memref<36x256xbf16, #tpu.memory_space<vmem>>, vector<4x256xbf16>
    tpu.vector_store %arg13[%c0_18, %c0_19], %41 {strides = array<i32>} : memref<36x256xbf16, #tpu.memory_space<vmem>>, vector<4x256xbf16>,
    %c32_i32 = arith.constant 32 : i32
    %43 = tpu.dynamic_rotate %36 by %c32_i32 dim 1 : vector<4x512xf32>, i32 -> vector<4x512xf32>
    %44 = vector.extract_strided_slice %43 {offsets = [0, 128], sizes = [4, 256], strides = [1, 1]} : vector<4x512xf32> to vector<4x256xf32>
    %45 = arith.truncf %44 : vector<4x256xf32> to vector<4x256xbf16>
    %c4 = arith.constant 4 : index
    %c0_20 = arith.constant 0 : index
    %46 = vector.load %arg13[%c4, %c0_20] : memref<36x256xbf16, #tpu.memory_space<vmem>>, vector<4x256xbf16>
    tpu.vector_store %arg13[%c4, %c0_20], %45 {strides = array<i32>} : memref<36x256xbf16, #tpu.memory_space<vmem>>, vector<4x256xbf16>,
    %c30_i32 = arith.constant 30 : i32
    %47 = tpu.dynamic_rotate %36 by %c30_i32 dim 1 : vector<4x512xf32>, i32 -> vector<4x512xf32>
    %48 = vector.extract_strided_slice %47 {offsets = [0, 128], sizes = [4, 256], strides = [1, 1]} : vector<4x512xf32> to vector<4x256xf32>
    %49 = vector.broadcast %35 : vector<1x256xf32> to vector<4x256xf32>
    %50 = arith.mulf %48, %49 : vector<4x256xf32>
    %51 = arith.truncf %50 : vector<4x256xf32> to vector<4x256xbf16>
    %c8 = arith.constant 8 : index
    %c0_21 = arith.constant 0 : index
    %52 = vector.load %arg13[%c8, %c0_21] : memref<36x256xbf16, #tpu.memory_space<vmem>>, vector<4x256xbf16>
    tpu.vector_store %arg13[%c8, %c0_21], %51 {strides = array<i32>} : memref<36x256xbf16, #tpu.memory_space<vmem>>, vector<4x256xbf16>,
    %c2_i32_22 = arith.constant 2 : i32
    %53 = tpu.dynamic_rotate %36 by %c2_i32_22 dim 1 : vector<4x512xf32>, i32 -> vector<4x512xf32>
    %54 = vector.extract_strided_slice %53 {offsets = [0, 128], sizes = [4, 256], strides = [1, 1]} : vector<4x512xf32> to vector<4x256xf32>
    %55 = vector.broadcast %31 : vector<1x256xf32> to vector<4x256xf32>
    %56 = arith.mulf %54, %55 : vector<4x256xf32>
    %57 = arith.truncf %56 : vector<4x256xf32> to vector<4x256xbf16>
    %c12 = arith.constant 12 : index
    %c0_23 = arith.constant 0 : index
    %58 = vector.load %arg13[%c12, %c0_23] : memref<36x256xbf16, #tpu.memory_space<vmem>>, vector<4x256xbf16>
    tpu.vector_store %arg13[%c12, %c0_23], %57 {strides = array<i32>} : memref<36x256xbf16, #tpu.memory_space<vmem>>, vector<4x256xbf16>,
    %59 = vector.extract_strided_slice %36 {offsets = [0, 128], sizes = [4, 256], strides = [1, 1]} : vector<4x512xf32> to vector<4x256xf32>
    %60 = arith.truncf %59 : vector<4x256xf32> to vector<4x256xbf16>
    %c16 = arith.constant 16 : index
    %c0_24 = arith.constant 0 : index
    %61 = vector.load %arg13[%c16, %c0_24] : memref<36x256xbf16, #tpu.memory_space<vmem>>, vector<4x256xbf16>
    tpu.vector_store %arg13[%c16, %c0_24], %60 {strides = array<i32>} : memref<36x256xbf16, #tpu.memory_space<vmem>>, vector<4x256xbf16>,
    %c510_i32 = arith.constant 510 : i32
    %62 = tpu.dynamic_rotate %36 by %c510_i32 dim 1 : vector<4x512xf32>, i32 -> vector<4x512xf32>
    %63 = vector.extract_strided_slice %62 {offsets = [0, 128], sizes = [4, 256], strides = [1, 1]} : vector<4x512xf32> to vector<4x256xf32>
    %64 = vector.broadcast %35 : vector<1x256xf32> to vector<4x256xf32>
    %65 = arith.mulf %63, %64 : vector<4x256xf32>
    %66 = arith.truncf %65 : vector<4x256xf32> to vector<4x256xbf16>
    %c20 = arith.constant 20 : index
    %c0_25 = arith.constant 0 : index
    %67 = vector.load %arg13[%c20, %c0_25] : memref<36x256xbf16, #tpu.memory_space<vmem>>, vector<4x256xbf16>
    tpu.vector_store %arg13[%c20, %c0_25], %66 {strides = array<i32>} : memref<36x256xbf16, #tpu.memory_space<vmem>>, vector<4x256xbf16>,
    %c482_i32 = arith.constant 482 : i32
    %68 = tpu.dynamic_rotate %36 by %c482_i32 dim 1 : vector<4x512xf32>, i32 -> vector<4x512xf32>
    %69 = vector.extract_strided_slice %68 {offsets = [0, 128], sizes = [4, 256], strides = [1, 1]} : vector<4x512xf32> to vector<4x256xf32>
    %70 = vector.broadcast %31 : vector<1x256xf32> to vector<4x256xf32>
    %71 = arith.mulf %69, %70 : vector<4x256xf32>
    %72 = arith.truncf %71 : vector<4x256xf32> to vector<4x256xbf16>
    %c24 = arith.constant 24 : index
    %c0_26 = arith.constant 0 : index
    %73 = vector.load %arg13[%c24, %c0_26] : memref<36x256xbf16, #tpu.memory_space<vmem>>, vector<4x256xbf16>
    tpu.vector_store %arg13[%c24, %c0_26], %72 {strides = array<i32>} : memref<36x256xbf16, #tpu.memory_space<vmem>>, vector<4x256xbf16>,
    %c480_i32 = arith.constant 480 : i32
    %74 = tpu.dynamic_rotate %36 by %c480_i32 dim 1 : vector<4x512xf32>, i32 -> vector<4x512xf32>
    %75 = vector.extract_strided_slice %74 {offsets = [0, 128], sizes = [4, 256], strides = [1, 1]} : vector<4x512xf32> to vector<4x256xf32>
    %76 = arith.truncf %75 : vector<4x256xf32> to vector<4x256xbf16>
    %c28 = arith.constant 28 : index
    %c0_27 = arith.constant 0 : index
    %77 = vector.load %arg13[%c28, %c0_27] : memref<36x256xbf16, #tpu.memory_space<vmem>>, vector<4x256xbf16>
    tpu.vector_store %arg13[%c28, %c0_27], %76 {strides = array<i32>} : memref<36x256xbf16, #tpu.memory_space<vmem>>, vector<4x256xbf16>,
    %c478_i32 = arith.constant 478 : i32
    %78 = tpu.dynamic_rotate %36 by %c478_i32 dim 1 : vector<4x512xf32>, i32 -> vector<4x512xf32>
    %79 = vector.extract_strided_slice %78 {offsets = [0, 128], sizes = [4, 256], strides = [1, 1]} : vector<4x512xf32> to vector<4x256xf32>
    %80 = vector.broadcast %35 : vector<1x256xf32> to vector<4x256xf32>
    %81 = arith.mulf %79, %80 : vector<4x256xf32>
    %82 = arith.truncf %81 : vector<4x256xf32> to vector<4x256xbf16>
    %c32 = arith.constant 32 : index
    %c0_28 = arith.constant 0 : index
    %83 = vector.load %arg13[%c32, %c0_28] : memref<36x256xbf16, #tpu.memory_space<vmem>>, vector<4x256xbf16>
    tpu.vector_store %arg13[%c32, %c0_28], %82 {strides = array<i32>} : memref<36x256xbf16, #tpu.memory_space<vmem>>, vector<4x256xbf16>,
    %c0_29 = arith.constant 0 : index
    %c0_30 = arith.constant 0 : index
    %84 = vector.load %arg13[%c0_29, %c0_30] : memref<36x256xbf16, #tpu.memory_space<vmem>>, vector<36x256xbf16>
    %cst = arith.constant dense<0.000000e+00> : vector<4x256xf32>
    %85 = tpu.matmul %6, %84, %cst {dimension_numbers = #tpu.dot_dimension_numbers<[1], [0], [0], [1], [0, 0, 1, 1], [], []>} : vector<4x36xbf16>, vector<36x256xbf16>, vector<4x256xf32> -> vector<4x256xf32>
    %86 = vector.broadcast %8 : vector<4x1xf32> to vector<4x256xf32>
    %87 = arith.mulf %85, %86 : vector<4x256xf32>
    %88 = vector.broadcast %10 : vector<4x1xf32> to vector<4x256xf32>
    %89 = arith.addf %87, %88 : vector<4x256xf32>
    %c0_31 = arith.constant 0 : index
    %c0_32 = arith.constant 0 : index
    %90 = vector.load %arg11[%c0_31, %c0_32] : memref<4x256xf32, #tpu.memory_space<vmem>>, vector<4x256xf32>
    tpu.vector_store %arg11[%c0_31, %c0_32], %89 {strides = array<i32>} : memref<4x256xf32, #tpu.memory_space<vmem>>, vector<4x256xf32>,
    %c0_33 = arith.constant 0 : index
    %c0_34 = arith.constant 0 : index
    %91 = vector.load %arg11[%c0_33, %c0_34] : memref<4x256xf32, #tpu.memory_space<vmem>>, vector<4x256xf32>
    %c0_35 = arith.constant 0 : index
    %c128_36 = arith.constant 128 : index
    %92 = vector.load %arg12[%c0_35, %c128_36] : memref<4x512xf32, #tpu.memory_space<vmem>>, vector<4x256xf32>
    tpu.vector_store %arg12[%c0_35, %c128_36], %91 {strides = array<i32>} : memref<4x512xf32, #tpu.memory_space<vmem>>, vector<4x256xf32>,
    %c0_37 = arith.constant 0 : index
    %c0_38 = arith.constant 0 : index
    %c0_39 = arith.constant 0 : index
    %93 = vector.load %arg6[%c0_37, %c0_38, %c0_39] : memref<1x4x36xbf16, #tpu.memory_space<vmem>>, vector<1x4x36xbf16>
    %94 = vector.shape_cast %93 : vector<1x4x36xbf16> to vector<4x36xbf16>
    %c0_40 = arith.constant 0 : index
    %c0_41 = arith.constant 0 : index
    %c0_42 = arith.constant 0 : index
    %95 = vector.load %arg7[%c0_40, %c0_41, %c0_42] : memref<1x4x1xf32, #tpu.memory_space<vmem>>, vector<1x4x1xf32>
    %96 = vector.shape_cast %95 : vector<1x4x1xf32> to vector<4x1xf32>
    %c0_43 = arith.constant 0 : index
    %c0_44 = arith.constant 0 : index
    %c0_45 = arith.constant 0 : index
    %97 = vector.load %arg8[%c0_43, %c0_44, %c0_45] : memref<1x4x1xf32, #tpu.memory_space<vmem>>, vector<1x4x1xf32>
    %98 = vector.shape_cast %97 : vector<1x4x1xf32> to vector<4x1xf32>
    %99 = tpu.iota {dimensions = array<i32: 1>} : vector<1x256xi32>
    %c16_i32_46 = arith.constant 16 : i32
    %c0_i32_47 = arith.constant 0 : i32
    %100 = arith.cmpi eq, %c16_i32_46, %c0_i32_47 : i32
    %c1_i32_48 = arith.constant 1 : i32
    %101 = arith.select %100, %c1_i32_48, %c16_i32_46 : i32
    %102 = vector.broadcast %101 : i32 to vector<1x256xi32>
    %103 = arith.remsi %99, %102 : vector<1x256xi32>
    %c0_i32_49 = arith.constant 0 : i32
    %104 = vector.broadcast %c0_i32_49 : i32 to vector<1x256xi32>
    %105 = arith.cmpi ne, %103, %104 : vector<1x256xi32>
    %c0_i32_50 = arith.constant 0 : i32
    %106 = vector.broadcast %c0_i32_50 : i32 to vector<1x256xi32>
    %107 = arith.cmpi slt, %103, %106 : vector<1x256xi32>
    %c0_i32_51 = arith.constant 0 : i32
    %108 = arith.cmpi slt, %101, %c0_i32_51 : i32
    %109 = vector.broadcast %108 : i1 to vector<1x256xi1>
    %110 = vector.broadcast %109 : vector<1x256xi1> to vector<1x256xi1>
    %111 = arith.xori %107, %110 : vector<1x256xi1>
    %112 = arith.andi %111, %105 : vector<1x256xi1>
    %113 = vector.broadcast %101 : i32 to vector<1x256xi32>
    %114 = arith.addi %103, %113 : vector<1x256xi32>
    %115 = arith.select %112, %114, %103 : vector<1x256xi1>, vector<1x256xi32>
    %c3_i32 = arith.constant 3 : i32
    %116 = vector.broadcast %c3_i32 : i32 to vector<1x256xi32>
    %117 = arith.cmpi sge, %115, %116 : vector<1x256xi32>
    %118 = arith.extui %117 : vector<1x256xi1> to vector<1x256xi32>
    %119 = arith.sitofp %118 : vector<1x256xi32> to vector<1x256xf32>
    %c13_i32 = arith.constant 13 : i32
    %120 = vector.broadcast %c13_i32 : i32 to vector<1x256xi32>
    %121 = arith.cmpi slt, %115, %120 : vector<1x256xi32>
    %122 = arith.extui %121 : vector<1x256xi1> to vector<1x256xi32>
    %123 = arith.sitofp %122 : vector<1x256xi32> to vector<1x256xf32>
    %c0_52 = arith.constant 0 : index
    %c0_53 = arith.constant 0 : index
    %124 = vector.load %arg12[%c0_52, %c0_53] : memref<4x512xf32, #tpu.memory_space<vmem>>, vector<4x512xf32>
    %c51_i32 = arith.constant 51 : i32
    %125 = tpu.dynamic_rotate %124 by %c51_i32 dim 1 : vector<4x512xf32>, i32 -> vector<4x512xf32>
    %126 = vector.extract_strided_slice %125 {offsets = [0, 128], sizes = [4, 256], strides = [1, 1]} : vector<4x512xf32> to vector<4x256xf32>
    %127 = vector.broadcast %119 : vector<1x256xf32> to vector<4x256xf32>
    %128 = arith.mulf %126, %127 : vector<4x256xf32>
    %129 = arith.truncf %128 : vector<4x256xf32> to vector<4x256xbf16>
    %c0_54 = arith.constant 0 : index
    %c0_55 = arith.constant 0 : index
    %130 = vector.load %arg13[%c0_54, %c0_55] : memref<36x256xbf16, #tpu.memory_space<vmem>>, vector<4x256xbf16>
    tpu.vector_store %arg13[%c0_54, %c0_55], %129 {strides = array<i32>} : memref<36x256xbf16, #tpu.memory_space<vmem>>, vector<4x256xbf16>,
    %c48_i32 = arith.constant 48 : i32
    %131 = tpu.dynamic_rotate %124 by %c48_i32 dim 1 : vector<4x512xf32>, i32 -> vector<4x512xf32>
    %132 = vector.extract_strided_slice %131 {offsets = [0, 128], sizes = [4, 256], strides = [1, 1]} : vector<4x512xf32> to vector<4x256xf32>
    %133 = arith.truncf %132 : vector<4x256xf32> to vector<4x256xbf16>
    %c4_56 = arith.constant 4 : index
    %c0_57 = arith.constant 0 : index
    %134 = vector.load %arg13[%c4_56, %c0_57] : memref<36x256xbf16, #tpu.memory_space<vmem>>, vector<4x256xbf16>
    tpu.vector_store %arg13[%c4_56, %c0_57], %133 {strides = array<i32>} : memref<36x256xbf16, #tpu.memory_space<vmem>>, vector<4x256xbf16>,
    %c45_i32 = arith.constant 45 : i32
    %135 = tpu.dynamic_rotate %124 by %c45_i32 dim 1 : vector<4x512xf32>, i32 -> vector<4x512xf32>
    %136 = vector.extract_strided_slice %135 {offsets = [0, 128], sizes = [4, 256], strides = [1, 1]} : vector<4x512xf32> to vector<4x256xf32>
    %137 = vector.broadcast %123 : vector<1x256xf32> to vector<4x256xf32>
    %138 = arith.mulf %136, %137 : vector<4x256xf32>
    %139 = arith.truncf %138 : vector<4x256xf32> to vector<4x256xbf16>
    %c8_58 = arith.constant 8 : index
    %c0_59 = arith.constant 0 : index
    %140 = vector.load %arg13[%c8_58, %c0_59] : memref<36x256xbf16, #tpu.memory_space<vmem>>, vector<4x256xbf16>
    tpu.vector_store %arg13[%c8_58, %c0_59], %139 {strides = array<i32>} : memref<36x256xbf16, #tpu.memory_space<vmem>>, vector<4x256xbf16>,
    %c3_i32_60 = arith.constant 3 : i32
    %141 = tpu.dynamic_rotate %124 by %c3_i32_60 dim 1 : vector<4x512xf32>, i32 -> vector<4x512xf32>
    %142 = vector.extract_strided_slice %141 {offsets = [0, 128], sizes = [4, 256], strides = [1, 1]} : vector<4x512xf32> to vector<4x256xf32>
    %143 = vector.broadcast %119 : vector<1x256xf32> to vector<4x256xf32>
    %144 = arith.mulf %142, %143 : vector<4x256xf32>
    %145 = arith.truncf %144 : vector<4x256xf32> to vector<4x256xbf16>
    %c12_61 = arith.constant 12 : index
    %c0_62 = arith.constant 0 : index
    %146 = vector.load %arg13[%c12_61, %c0_62] : memref<36x256xbf16, #tpu.memory_space<vmem>>, vector<4x256xbf16>
    tpu.vector_store %arg13[%c12_61, %c0_62], %145 {strides = array<i32>} : memref<36x256xbf16, #tpu.memory_space<vmem>>, vector<4x256xbf16>,
    %147 = vector.extract_strided_slice %124 {offsets = [0, 128], sizes = [4, 256], strides = [1, 1]} : vector<4x512xf32> to vector<4x256xf32>
    %148 = arith.truncf %147 : vector<4x256xf32> to vector<4x256xbf16>
    %c16_63 = arith.constant 16 : index
    %c0_64 = arith.constant 0 : index
    %149 = vector.load %arg13[%c16_63, %c0_64] : memref<36x256xbf16, #tpu.memory_space<vmem>>, vector<4x256xbf16>
    tpu.vector_store %arg13[%c16_63, %c0_64], %148 {strides = array<i32>} : memref<36x256xbf16, #tpu.memory_space<vmem>>, vector<4x256xbf16>,
    %c509_i32 = arith.constant 509 : i32
    %150 = tpu.dynamic_rotate %124 by %c509_i32 dim 1 : vector<4x512xf32>, i32 -> vector<4x512xf32>
    %151 = vector.extract_strided_slice %150 {offsets = [0, 128], sizes = [4, 256], strides = [1, 1]} : vector<4x512xf32> to vector<4x256xf32>
    %152 = vector.broadcast %123 : vector<1x256xf32> to vector<4x256xf32>
    %153 = arith.mulf %151, %152 : vector<4x256xf32>
    %154 = arith.truncf %153 : vector<4x256xf32> to vector<4x256xbf16>
    %c20_65 = arith.constant 20 : index
    %c0_66 = arith.constant 0 : index
    %155 = vector.load %arg13[%c20_65, %c0_66] : memref<36x256xbf16, #tpu.memory_space<vmem>>, vector<4x256xbf16>
    tpu.vector_store %arg13[%c20_65, %c0_66], %154 {strides = array<i32>} : memref<36x256xbf16, #tpu.memory_space<vmem>>, vector<4x256xbf16>,
    %c467_i32 = arith.constant 467 : i32
    %156 = tpu.dynamic_rotate %124 by %c467_i32 dim 1 : vector<4x512xf32>, i32 -> vector<4x512xf32>
    %157 = vector.extract_strided_slice %156 {offsets = [0, 128], sizes = [4, 256], strides = [1, 1]} : vector<4x512xf32> to vector<4x256xf32>
    %158 = vector.broadcast %119 : vector<1x256xf32> to vector<4x256xf32>
    %159 = arith.mulf %157, %158 : vector<4x256xf32>
    %160 = arith.truncf %159 : vector<4x256xf32> to vector<4x256xbf16>
    %c24_67 = arith.constant 24 : index
    %c0_68 = arith.constant 0 : index
    %161 = vector.load %arg13[%c24_67, %c0_68] : memref<36x256xbf16, #tpu.memory_space<vmem>>, vector<4x256xbf16>
    tpu.vector_store %arg13[%c24_67, %c0_68], %160 {strides = array<i32>} : memref<36x256xbf16, #tpu.memory_space<vmem>>, vector<4x256xbf16>,
    %c464_i32 = arith.constant 464 : i32
    %162 = tpu.dynamic_rotate %124 by %c464_i32 dim 1 : vector<4x512xf32>, i32 -> vector<4x512xf32>
    %163 = vector.extract_strided_slice %162 {offsets = [0, 128], sizes = [4, 256], strides = [1, 1]} : vector<4x512xf32> to vector<4x256xf32>
    %164 = arith.truncf %163 : vector<4x256xf32> to vector<4x256xbf16>
    %c28_69 = arith.constant 28 : index
    %c0_70 = arith.constant 0 : index
    %165 = vector.load %arg13[%c28_69, %c0_70] : memref<36x256xbf16, #tpu.memory_space<vmem>>, vector<4x256xbf16>
    tpu.vector_store %arg13[%c28_69, %c0_70], %164 {strides = array<i32>} : memref<36x256xbf16, #tpu.memory_space<vmem>>, vector<4x256xbf16>,
    %c461_i32 = arith.constant 461 : i32
    %166 = tpu.dynamic_rotate %124 by %c461_i32 dim 1 : vector<4x512xf32>, i32 -> vector<4x512xf32>
    %167 = vector.extract_strided_slice %166 {offsets = [0, 128], sizes = [4, 256], strides = [1, 1]} : vector<4x512xf32> to vector<4x256xf32>
    %168 = vector.broadcast %123 : vector<1x256xf32> to vector<4x256xf32>
    %169 = arith.mulf %167, %168 : vector<4x256xf32>
    %170 = arith.truncf %169 : vector<4x256xf32> to vector<4x256xbf16>
    %c32_71 = arith.constant 32 : index
    %c0_72 = arith.constant 0 : index
    %171 = vector.load %arg13[%c32_71, %c0_72] : memref<36x256xbf16, #tpu.memory_space<vmem>>, vector<4x256xbf16>
    tpu.vector_store %arg13[%c32_71, %c0_72], %170 {strides = array<i32>} : memref<36x256xbf16, #tpu.memory_space<vmem>>, vector<4x256xbf16>,
    %c0_73 = arith.constant 0 : index
    %c0_74 = arith.constant 0 : index
    %172 = vector.load %arg13[%c0_73, %c0_74] : memref<36x256xbf16, #tpu.memory_space<vmem>>, vector<36x256xbf16>
    %cst_75 = arith.constant dense<0.000000e+00> : vector<4x256xf32>
    %173 = tpu.matmul %94, %172, %cst_75 {dimension_numbers = #tpu.dot_dimension_numbers<[1], [0], [0], [1], [0, 0, 1, 1], [], []>} : vector<4x36xbf16>, vector<36x256xbf16>, vector<4x256xf32> -> vector<4x256xf32>
    %174 = vector.broadcast %96 : vector<4x1xf32> to vector<4x256xf32>
    %175 = arith.mulf %173, %174 : vector<4x256xf32>
    %176 = vector.broadcast %98 : vector<4x1xf32> to vector<4x256xf32>
    %177 = arith.addf %175, %176 : vector<4x256xf32>
    %c0_76 = arith.constant 0 : index
    %c0_77 = arith.constant 0 : index
    %178 = vector.load %arg10[%c0_76, %c0_77] : memref<4x256xf32, #tpu.memory_space<vmem>>, vector<4x256xf32>
    %179 = arith.addf %178, %177 : vector<4x256xf32>
    %180 = arith.negf %179 : vector<4x256xf32>
    %181 = math.exp %180 : vector<4x256xf32>
    %cst_78 = arith.constant 1.000000e+00 : f32
    %182 = vector.broadcast %cst_78 : f32 to vector<4x256xf32>
    %183 = arith.addf %182, %181 : vector<4x256xf32>
    %184 = arith.divf %182, %183 : vector<4x256xf32>
    %185 = arith.mulf %179, %184 : vector<4x256xf32>
    %c0_79 = arith.constant 0 : index
    %c0_80 = arith.constant 0 : index
    %186 = vector.load %arg10[%c0_79, %c0_80] : memref<4x256xf32, #tpu.memory_space<vmem>>, vector<4x256xf32>
    tpu.vector_store %arg10[%c0_79, %c0_80], %185 {strides = array<i32>} : memref<4x256xf32, #tpu.memory_space<vmem>>, vector<4x256xf32>,
    %c3_i32_81 = arith.constant 3 : i32
    %187 = arith.cmpi eq, %arg1, %c3_i32_81 : i32
    %188 = arith.extui %187 : i1 to i32
    %c0_i32_82 = arith.constant 0 : i32
    %189 = arith.cmpi ne, %188, %c0_i32_82 : i32
    scf.if %189 {
      %c0_83 = arith.constant 0 : index
      %c0_84 = arith.constant 0 : index
      %190 = vector.load %arg10[%c0_83, %c0_84] : memref<4x256xf32, #tpu.memory_space<vmem>>, vector<4x256xf32>
      %191 = arith.truncf %190 : vector<4x256xf32> to vector<4x256xbf16>
      %c0_85 = arith.constant 0 : index
      %c0_86 = arith.constant 0 : index
      %c0_87 = arith.constant 0 : index
      %192 = vector.load %arg9[%c0_85, %c0_86, %c0_87] : memref<1x4x256xbf16, #tpu.memory_space<vmem>>, vector<1x4x256xbf16>
      %193 = vector.shape_cast %192 : vector<1x4x256xbf16> to vector<4x256xbf16>
      %194 = vector.shape_cast %191 : vector<4x256xbf16> to vector<1x4x256xbf16>
      tpu.vector_store %arg9[%c0_85, %c0_86, %c0_87], %194 {strides = array<i32>} : memref<1x4x256xbf16, #tpu.memory_space<vmem>>, vector<1x4x256xbf16>,
    } else {
    }
    return
  }
  func.func @transform_0(%arg0: i32, %arg1: i32) -> (i32, i32, i32) {
    %c0_i32 = arith.constant 0 : i32
    %c0_i32_0 = arith.constant 0 : i32
    %c0_i32_1 = arith.constant 0 : i32
    return %arg0, %c0_i32, %c0_i32_0 : i32, i32, i32
  }
  func.func @transform_1(%arg0: i32, %arg1: i32) -> (i32, i32, i32) {
    %c0_i32 = arith.constant 0 : i32
    %c0_i32_0 = arith.constant 0 : i32
    %c0_i32_1 = arith.constant 0 : i32
    return %arg1, %c0_i32, %c0_i32_0 : i32, i32, i32
  }
  func.func @transform_2(%arg0: i32, %arg1: i32) -> (i32, i32, i32) {
    %c0_i32 = arith.constant 0 : i32
    %c0_i32_0 = arith.constant 0 : i32
    %c0_i32_1 = arith.constant 0 : i32
    return %arg1, %c0_i32, %c0_i32_0 : i32, i32, i32
  }
  func.func @transform_3(%arg0: i32, %arg1: i32) -> (i32, i32, i32) {
    %c0_i32 = arith.constant 0 : i32
    %c0_i32_0 = arith.constant 0 : i32
    %c0_i32_1 = arith.constant 0 : i32
    return %arg1, %c0_i32, %c0_i32_0 : i32, i32, i32
  }
  func.func @transform_4(%arg0: i32, %arg1: i32) -> (i32, i32, i32) {
    %c0_i32 = arith.constant 0 : i32
    %c0_i32_0 = arith.constant 0 : i32
    %c0_i32_1 = arith.constant 0 : i32
    return %arg1, %c0_i32, %c0_i32_0 : i32, i32, i32
  }
  func.func @transform_5(%arg0: i32, %arg1: i32) -> (i32, i32, i32) {
    %c0_i32 = arith.constant 0 : i32
    %c0_i32_0 = arith.constant 0 : i32
    %c0_i32_1 = arith.constant 0 : i32
    return %arg1, %c0_i32, %c0_i32_0 : i32, i32, i32
  }
  func.func @transform_6(%arg0: i32, %arg1: i32) -> (i32, i32, i32) {
    %c0_i32 = arith.constant 0 : i32
    %c0_i32_0 = arith.constant 0 : i32
    %c0_i32_1 = arith.constant 0 : i32
    return %arg1, %c0_i32, %c0_i32_0 : i32, i32, i32
  }
  func.func @transform_7(%arg0: i32, %arg1: i32) -> (i32, i32, i32) {
    %c0_i32 = arith.constant 0 : i32
    %c0_i32_0 = arith.constant 0 : i32
    %c0_i32_1 = arith.constant 0 : i32
    return %arg0, %c0_i32, %c0_i32_0 : i32, i32, i32
  }
}

</mosaic_0001>

<bundles_post_ra>
// kernel: dialted_c3_pallas.5
= control target key start
LH: loop header
LB: loop body
LE: loop exit
PB: predicated region body
PF: predicated region fallthrough
CT: control target
= control target key end

     0   :  { %s687_s21 = smov 0   ;;  %s689_s22 = smov 0   ;;  %s743_s0 = inlined_call_operand.vmem [shape: bf16[2,4,256], index: 0, kind: input, shape index: {}]   ;;  %s744_s1 = inlined_call_operand.vmem [shape: bf16[2,4,256], index: 1, kind: input, shape index: {}]   ;;  %s745_s2 = inlined_call_operand.vmem [shape: bf16[8,4], index: 2, kind: input, shape index: {}]   ;;  %s746_s3 = inlined_call_operand.vmem [shape: bf16[8,4], index: 3, kind: input, shape index: {}]   ;;  %s747_s4 = inlined_call_operand.vmem [shape: f32[8,1], index: 4, kind: input, shape index: {}]   ;;  %s748_s5 = inlined_call_operand.vmem [shape: f32[8,1], index: 5, kind: input, shape index: {}]   ;;  %s749_s6 = inlined_call_operand.vmem [shape: f32[2,8,256], index: 6, kind: output, shape index: {}]  }
   0x1   :  { %s691_s23 = smov 0  }
   0x2 LB: > { %s28_s24 = sadd.s32 1, %s645_s22  ;;  %p575_p0 = scmp.ge.s32.totalorder %s649_s23, 1  ;;  %s649_s23 = sphi %s691_s23, %s16_s23   ;;  %s645_s22 = sphi %s689_s22, %s751_s22   ;;  %s641_s21 = sphi %s687_s21, %s750_s21  }
   0x3   : > { %p30_p1 = scmp.ge.s32.totalorder %s28_s24, 2  ;;  %p250_p2 = scmp.lt.s32.totalorder %s649_s23, 3 }
   0x5   : > { %s753_s24 = smov (%p30_p1, %s28_s24), 0  ;;  %p251_p3 = pnand %p575_p0, %p250_p2 }
   0x6   : > { %p298_p4 = scmp.lt.s32.totalorder (!%p251_p3), %s641_s21, 1 }
   0x7   : > { %254 = sbr.rel (%p251_p3) target bundleno = 206 (0xce), region = 44 }
   0xc   : > { %v651_v0 = vmov 0   ;;  %v408_v1 = vld [vmem:[%s747_s4] sm:$0xff]  ;;  %s755_s21 = smov (!%p298_p4, %s641_s21), 1  ;;  %vm340_vm0 = vcmask 1041408   ;;  %vm336_vm1 = vcmask 31744  }
   0xd   : > { %618 = vset.pattern.permute.xlu0 %v651_v0  ;;  %s590_s27 = sshll.u32 %s755_s21, 2  ;;  %v416_v3 = vld [vmem:[%s748_s5] sm:$0xff]  ;;  %s592_s16 = sshll.u32 %s755_s21, 4 }
   0xe   : > { %411 = vperm.xlu0 %618, %v408_v1   ;;  %s315_s30 = scalar_lea.vmem %s744_s1, %s590_s27  ;;  %s305_s11 = scalar_lea.vmem %s743_s0, %s590_s27  ;;  %v331_v9 = vld [vmem:[%s746_s3] sm:$0xf] }
   0xf   : > { %v329_v2 = vld [vmem:[%s315_s30] sm:$0xf]  ;;  %s325_s19 = scalar_lea.vmem %s749_s6, %s592_s16 }
  0x10   : > { %333 = vst [vmem:[#allocation1] ss:$4 sm:$0xff] %v329_v2  ;;  %v328_v4 = vld [vmem:[%s305_s11] sm:$0xf] }
  0x11   : > { %v330_v14 = vld [vmem:[%s745_s2] sm:$0xf] }
  0x16   : > { %419 = vperm.xlu0 %618, %v416_v3  }
  0x17   : > { %v334_v5 = vld.sshfl [vmem:[#allocation1] sm:$0xff pattern:$0x73625140]  ;;  %v335_v6 = vld.sshfl [vmem:[#allocation1 + $0x8] sm:$0xff pattern:$0x73625140] }
  0x18   : > { %v341_v7 = vsel %vm340_vm0, %v334_v5, 0  ;;  %v343_v8 = vsel %vm340_vm0, %v335_v6, 0  ;;  %372 = vst [vmem:[#allocation1] ss:$4 sm:$0xff] %v328_v4 }
  0x19   : > { %352 = vmatpush.bf16.msra.mxu0 %v341_v7  ;;  %365 = vmatpush.bf16.msra.mxu1 %v343_v8 }
  0x1c   : > { %582 = vmatmul.msk.bf16.vlgmr.msra.gmra.mxu0 %vm336_vm1, %v331_v9  ;;  %583 = vmatmul.msk.bf16.vlgmr.msra.gmra.mxu1 %vm336_vm1, %v331_v9 }
  0x1f   : > { %v373_v10 = vld.sshfl [vmem:[#allocation1] sm:$0xff pattern:$0x73625140]  ;;  %v374_v11 = vld.sshfl [vmem:[#allocation1 + $0x8] sm:$0xff pattern:$0x73625140] }
  0x20   : > { %v378_v12 = vsel %vm340_vm0, %v373_v10, 0  ;;  %v380_v13 = vsel %vm340_vm0, %v374_v11, 0 }
  0x21   : > { %389 = vmatpush.bf16.msra.mxu2 %v378_v12  ;;  %402 = vmatpush.bf16.msra.mxu3 %v380_v13 }
  0x24   : > { %584 = vmatmul.msk.bf16.vlgmr.msra.gmra.mxu2 %vm336_vm1, %v330_v14  ;;  %585 = vmatmul.msk.bf16.vlgmr.msra.gmra.mxu3 %vm336_vm1, %v330_v14 }
  0x80   : > { %v412_v17 = vpop.permute.xlu0 %411 }
  0x88   : > { %v420_v26 = vpop.permute.xlu0 %419 }
  0x99   : > { %v354_v15 = vpop.f32.mrf.mxu0  ;;  %v367_v16 = vpop.f32.mrf.mxu1 }
  0xa1   : > { %v356_v18 = vpop.f32.mrf.mxu0  ;;  %v369_v19 = vpop.f32.mrf.mxu1 }
  0xa7   : > { %v391_v20 = vpop.f32.mrf.mxu2  ;;  %v404_v21 = vpop.f32.mrf.mxu3 }
  0xa8   : > { %v392_v22 = vadd.f32 %v391_v20, %v354_v15  ;;  %v405_v23 = vadd.f32 %v404_v21, %v367_v16 }
  0xaa   : > { %v414_v24 = vmul.f32 %v412_v17, %v392_v22  ;;  %v415_v25 = vmul.f32 %v412_v17, %v405_v23 }
  0xac   : > { %v422_v27 = vadd.f32 %v420_v26, %v414_v24  ;;  %v423_v28 = vadd.f32 %v420_v26, %v415_v25 }
  0xae   : > { %v586_v29 = vmul.f32 -1.442695, %v422_v27  ;;  %v587_v30 = vmul.f32 -1.442695, %v423_v28 }
  0xaf   : > { %v393_v31 = vpop.f32.mrf.mxu2  ;;  %v406_v32 = vpop.f32.mrf.mxu3 }
  0xb0   : > { %619 = vpow2.f32 %v586_v29 }
  0xb1   : > { %621 = vpow2.f32 %v587_v30 }
  0xb6   : > { %v620_v33 = vpop.eup %619 }
  0xb7   : > { %v622_v34 = vpop.eup %621  ;;  %v430_v35 = vadd.f32 1.0, %v620_v33 }
  0xb8   : > { %v431_v36 = vadd.f32 1.0, %v622_v34 }
  0xb9   : > { %623 = vrcp.f32 %v430_v35  ;;  %v443_v42 = vand.u32 2147483648, %v430_v35  ;;  %v441_v45 = vand.u32 2147483647, %v430_v35  ;;  %vm437_vm4 = vweird.f32 %v430_v35 }
  0xba   : > { %625 = vrcp.f32 %v431_v36  ;;  %v458_v46 = vand.u32 2147483648, %v431_v36  ;;  %v456_v48 = vand.u32 2147483647, %v431_v36  ;;  %vm452_vm6 = vweird.f32 %v431_v36 }
  0xbb   : > { %v444_v50 = vor.u32 1.1754944e-38, %v443_v42  ;;  %vm442_vm7 = vcmp.eq.f32.partialorder %v441_v45, 8.507059e+37 }
  0xbc   : > { %v459_v53 = vor.u32 1.1754944e-38, %v458_v46  ;;  %vm457_vm9 = vcmp.eq.f32.partialorder %v456_v48, 8.507059e+37 }
  0xbf   : > { %v624_v37 = vpop.eup %623 }
  0xc0   : > { %v626_v38 = vpop.eup %625  ;;  %v433_v39 = vmul.f32 %v624_v37, %v430_v35  ;;  %vm438_vm2 = vweird.f32 %v624_v37 }
  0xc1   : > { %v448_v40 = vmul.f32 %v626_v38, %v431_v36  ;;  %vm453_vm3 = vweird.f32 %v626_v38  ;;  %vm439_vm5 = vmor %vm437_vm4, %vm438_vm2 }
  0xc2   : > { %v434_v41 = vsub.f32 1.0, %v433_v39  ;;  %vm454_vm8 = vmor %vm452_vm6, %vm453_vm3 }
  0xc3   : > { %v449_v43 = vsub.f32 1.0, %v448_v40 }
  0xc4   : > { %v435_v44 = vmul.f32 %v624_v37, %v434_v41 }
  0xc5   : > { %v450_v47 = vmul.f32 %v626_v38, %v449_v43 }
  0xc6   : > { %v436_v49 = vadd.f32 %v624_v37, %v435_v44 }
  0xc7   : > { %v451_v51 = vadd.f32 %v626_v38, %v450_v47 }
  0xc8   : > { %v440_v52 = vsel %vm439_vm5, %v624_v37, %v436_v49 }
  0xc9   : > { %v445_v54 = vsel %vm442_vm7, %v444_v50, %v440_v52  ;;  %v455_v55 = vsel %vm454_vm8, %v626_v38, %v451_v51 }
  0xca   : > { %v462_v56 = vmul.f32 %v445_v54, %v422_v27  ;;  %v460_v57 = vsel %vm457_vm9, %v459_v53, %v455_v55 }
  0xcb   : > { %v463_v58 = vmul.f32 %v460_v57, %v423_v28 }
  0xcc   : > { %464 = vst [vmem:[%s325_s19] sm:$0xff] %v462_v56 }
  0xcd   : > { %465 = vst [vmem:[%s325_s19 + $0x8] sm:$0xff] %v463_v58 }
  0xce PF: > { %s16_s23 = sadd.s32 1, %s649_s23   ;;  %s750_s21 = smov %s645_s22 }
  0xcf   : > { %p13_p5 = scmp.ge.s32.totalorder %s16_s23, 4   ;;  %s751_s22 = smov %s753_s24 }
  0xd1   :  { %15 = sbr.rel (!%p13_p5) target bundleno = 2 (0x2), region = 77 }

// kernel: dialted_c3_pallas.3
= control target key start
LH: loop header
LB: loop body
LE: loop exit
PB: predicated region body
PF: predicated region fallthrough
CT: control target
= control target key end

     0   :  { %s845_s27 = smov 0   ;;  %s847_s28 = smov 0   ;;  %s928_s0 = inlined_call_operand.vmem [shape: f32[2,8,256], index: 0, kind: input, shape index: {}]   ;;  %s929_s1 = inlined_call_operand.vmem [shape: bf16[4,8], index: 1, kind: input, shape index: {}]   ;;  %s930_s2 = inlined_call_operand.vmem [shape: f32[4,1], index: 2, kind: input, shape index: {}]   ;;  %s931_s3 = inlined_call_operand.vmem [shape: f32[4,1], index: 3, kind: input, shape index: {}]   ;;  %s932_s4 = inlined_call_operand.vmem [shape: bf16[4,8], index: 4, kind: input, shape index: {}]   ;;  %s933_s5 = inlined_call_operand.vmem [shape: f32[4,1], index: 5, kind: input, shape index: {}]   ;;  %s934_s6 = inlined_call_operand.vmem [shape: f32[4,1], index: 6, kind: input, shape index: {}]   ;;  %s935_s7 = inlined_call_operand.vmem [shape: bf16[2,4,256], index: 7, kind: output, shape index: {0}]   ;;  %s936_s8 = inlined_call_operand.vmem [shape: bf16[2,4,256], index: 8, kind: output, shape index: {1}]  }
   0x1   :  { %s849_s29 = smov 0  }
   0x2 LB: > { %s31_s30 = sadd.s32 1, %s793_s28  ;;  %p712_p0 = scmp.ge.s32.totalorder %s797_s29, 1  ;;  %s797_s29 = sphi %s849_s29, %s19_s29   ;;  %s793_s28 = sphi %s847_s28, %s938_s28   ;;  %s789_s27 = sphi %s845_s27, %s937_s27  }
   0x3   : > { %p33_p1 = scmp.ge.s32.totalorder %s31_s30, 2  ;;  %p288_p2 = scmp.lt.s32.totalorder %s797_s29, 3 }
   0x5   : > { %s940_s30 = smov (%p33_p1, %s31_s30), 0  ;;  %p289_p3 = pnand %p712_p0, %p288_p2 }
   0x6   : > { %p340_p4 = scmp.lt.s32.totalorder (!%p289_p3), %s789_s27, 1 }
   0x7   : > { %292 = sbr.rel (%p289_p3) target bundleno = 197 (0xc5), region = 48 }
   0xc   : > { %v799_v0 = vmov 0   ;;  %v412_v1 = vld [vmem:[%s930_s2] sm:$0xf]  ;;  %s942_s27 = smov (!%p340_p4, %s789_s27), 1  ;;  %vm379_vm0 = vcmask 1043456   ;;  %vm375_vm1 = vcmask 64512  }
   0xd   : > { %757 = vset.pattern.permute.xlu0 %v799_v0  ;;  %758 = vset.pattern.permute.xlu1 %v799_v0  ;;  %v420_v2 = vld [vmem:[%s931_s3] sm:$0xf]  ;;  %s729_s13 = sshll.u32 %s942_s27, 4  ;;  %s730_s25 = sshll.u32 %s942_s27, 2  ;;  %vm471_vm13 = vcmask 1041408  }
   0xe   : > { %415 = vperm.xlu0 %757, %v412_v1   ;;  %423 = vperm.xlu1 %758, %v420_v2   ;;  %s347_s16 = scalar_lea.vmem %s928_s0, %s729_s13  ;;  %v507_v9 = vld [vmem:[%s933_s5] sm:$0xf]  ;;  %s357_s10 = scalar_lea.vmem %s935_s7, %s730_s25 }
   0xf   : > { %v370_v3 = vld [vmem:[%s347_s16] sm:$0xff]  ;;  %v371_v4 = vld [vmem:[%s347_s16 + $0x8] sm:$0xff]  ;;  %s367_s12 = scalar_lea.vmem %s936_s8, %s730_s25 }
  0x10   : > { %v372_v5 = vpack.c.bf16 %v370_v3, %v370_v3  ;;  %v373_v6 = vpack.c.bf16 %v371_v4, %v371_v4  ;;  %v515_v10 = vld [vmem:[%s934_s6] sm:$0xf] }
  0x11   : > { %v374_v11 = vld [vmem:[%s929_s1] sm:$0x3] }
  0x12   : > { %v381_v7 = vsel %vm379_vm0, %v372_v5, 0  ;;  %v384_v8 = vsel %vm379_vm0, %v373_v6, 0  ;;  %v477_v12 = vld [vmem:[%s932_s4] sm:$0x3] }
  0x13   : > { %393 = vmatpush.bf16.msra.mxu0 %v381_v7  ;;  %406 = vmatpush.bf16.msra.mxu1 %v384_v8 }
  0x14   : > { %488 = vmatpush.bf16.msra.mxu2 %v381_v7  ;;  %501 = vmatpush.bf16.msra.mxu3 %v384_v8 }
  0x16   : > { %510 = vperm.xlu0 %757, %v507_v9   ;;  %518 = vperm.xlu1 %758, %v515_v10  }
  0x17   : > { %719 = vmatmul.msk.bf16.vlgmr.msra.gmra.mxu0 %vm375_vm1, %v374_v11  ;;  %720 = vmatmul.msk.bf16.vlgmr.msra.gmra.mxu1 %vm375_vm1, %v374_v11 }
  0x18   : > { %723 = vmatmul.msk.bf16.vlgmr.msra.gmra.mxu2 %vm375_vm1, %v477_v12  ;;  %724 = vmatmul.msk.bf16.vlgmr.msra.gmra.mxu3 %vm375_vm1, %v477_v12 }
  0x80   : > { %v416_v13 = vpop.permute.xlu0 %415  ;;  %v424_v14 = vpop.permute.xlu1 %423 }
  0x88   : > { %v511_v23 = vpop.permute.xlu0 %510  ;;  %v519_v30 = vpop.permute.xlu1 %518 }
  0x94   : > { %v395_v15 = vpop.f32.mrf.mxu0  ;;  %v408_v16 = vpop.f32.mrf.mxu1 }
  0x95   : > { %v418_v17 = vmul.f32 %v416_v13, %v395_v15  ;;  %v419_v18 = vmul.f32 %v416_v13, %v408_v16 }
  0x97   : > { %v887_v19 = vadd.f32 %v424_v14, %v418_v17  ;;  %v889_v20 = vadd.f32 %v424_v14, %v419_v18 }
  0x99   : > { %v721_v21 = vmul.f32 -1.442695, %v887_v19  ;;  %v722_v22 = vmul.f32 -1.442695, %v889_v20 }
  0x9b   : > { %759 = vpow2.f32 %v721_v21  ;;  %v490_v24 = vpop.f32.mrf.mxu2  ;;  %v503_v25 = vpop.f32.mrf.mxu3 }
  0x9c   : > { %761 = vpow2.f32 %v722_v22  ;;  %v513_v26 = vmul.f32 %v511_v23, %v490_v24  ;;  %v514_v27 = vmul.f32 %v511_v23, %v503_v25  ;;  %v397_v28 = vpop.f32.mrf.mxu0  ;;  %v410_v29 = vpop.f32.mrf.mxu1 }
  0x9e   : > { %v893_v31 = vadd.f32 %v519_v30, %v513_v26  ;;  %v895_v32 = vadd.f32 %v519_v30, %v514_v27 }
  0xa0   : > { %v725_v33 = vmul.f32 -1.442695, %v893_v31  ;;  %v726_v34 = vmul.f32 -1.442695, %v895_v32 }
  0xa1   : > { %v760_v35 = vpop.eup %759 }
  0xa2   : > { %v762_v36 = vpop.eup %761  ;;  %v434_v37 = vadd.f32 1.0, %v760_v35  ;;  %763 = vpow2.f32 %v725_v33 }
  0xa3   : > { %v435_v38 = vadd.f32 1.0, %v762_v36  ;;  %765 = vpow2.f32 %v726_v34  ;;  %v492_v39 = vpop.f32.mrf.mxu2  ;;  %v505_v40 = vpop.f32.mrf.mxu3 }
  0xa4   : > { %767 = vrcp.f32 %v434_v37  ;;  %v445_v50 = vand.u32 2147483647, %v434_v37  ;;  %v447_v51 = vand.u32 2147483648, %v434_v37  ;;  %vm441_vm4 = vweird.f32 %v434_v37 }
  0xa5   : > { %769 = vrcp.f32 %v435_v38  ;;  %v460_v54 = vand.u32 2147483647, %v435_v38  ;;  %v462_v55 = vand.u32 2147483648, %v435_v38  ;;  %vm456_vm6 = vweird.f32 %v435_v38 }
  0xa6   : > { %v448_v59 = vor.u32 1.1754944e-38, %v447_v51  ;;  %vm446_vm7 = vcmp.eq.f32.partialorder %v445_v50, 8.507059e+37 }
  0xa7   : > { %vm461_vm9 = vcmp.eq.f32.partialorder %v460_v54, 8.507059e+37  ;;  %v463_v0 = vor.u32 1.1754944e-38, %v462_v55 }
  0xa8   : > { %v764_v41 = vpop.eup %763 }
  0xa9   : > { %v766_v42 = vpop.eup %765  ;;  %v529_v43 = vadd.f32 1.0, %v764_v41 }
  0xaa   : > { %v768_v44 = vpop.eup %767  ;;  %v899_v45 = vadd.f32 1.0, %v766_v42 }
  0xab   : > { %v770_v46 = vpop.eup %769  ;;  %v437_v47 = vmul.f32 %v768_v44, %v434_v37  ;;  %771 = vrcp.f32 %v529_v43  ;;  %vm442_vm2 = vweird.f32 %v768_v44  ;;  %v540_v7 = vand.u32 2147483647, %v529_v43 }
  0xac   : > { %v452_v48 = vmul.f32 %v770_v46, %v435_v38  ;;  %773 = vrcp.f32 %v899_v45  ;;  %vm457_vm3 = vweird.f32 %v770_v46  ;;  %vm443_vm5 = vmor %vm441_vm4, %vm442_vm2  ;;  %v542_v8 = vand.u32 2147483648, %v529_v43 }
  0xad   : > { %v438_v49 = vsub.f32 1.0, %v437_v47  ;;  %vm458_vm8 = vmor %vm456_vm6, %vm457_vm3  ;;  %vm536_vm11 = vweird.f32 %v529_v43  ;;  %v555_v12 = vand.u32 2147483647, %v899_v45  ;;  %v557_v13 = vand.u32 2147483648, %v899_v45 }
  0xae   : > { %v453_v52 = vsub.f32 1.0, %v452_v48  ;;  %v543_v17 = vor.u32 1.1754944e-38, %v542_v8  ;;  %vm551_vm15 = vweird.f32 %v899_v45  ;;  %vm541_vm0 = vcmp.eq.f32.partialorder %v540_v7, 8.507059e+37 }
  0xaf   : > { %v439_v53 = vmul.f32 %v768_v44, %v438_v49  ;;  %v558_v22 = vor.u32 1.1754944e-38, %v557_v13  ;;  %vm556_vm2 = vcmp.eq.f32.partialorder %v555_v12, 8.507059e+37 }
  0xb0   : > { %v454_v56 = vmul.f32 %v770_v46, %v453_v52 }
  0xb1   : > { %v772_v57 = vpop.eup %771  ;;  %v440_v58 = vadd.f32 %v768_v44, %v439_v53 }
  0xb2   : > { %v455_v60 = vadd.f32 %v770_v46, %v454_v56  ;;  %v532_v61 = vmul.f32 %v772_v57, %v529_v43  ;;  %v774_v62 = vpop.eup %773  ;;  %vm537_vm10 = vweird.f32 %v772_v57 }
  0xb3   : > { %v444_v63 = vsel %vm443_vm5, %v768_v44, %v440_v58  ;;  %v547_v4 = vmul.f32 %v774_v62, %v899_v45  ;;  %vm552_vm12 = vweird.f32 %v774_v62  ;;  %vm538_vm14 = vmor %vm536_vm11, %vm537_vm10 }
  0xb4   : > { %v449_v1 = vsel %vm446_vm7, %v448_v59, %v444_v63  ;;  %v459_v2 = vsel %vm458_vm8, %v770_v46, %v455_v60  ;;  %v533_v3 = vsub.f32 1.0, %v532_v61  ;;  %vm553_vm1 = vmor %vm551_vm15, %vm552_vm12 }
  0xb5   : > { %v466_v5 = vmul.f32 %v449_v1, %v887_v19  ;;  %v464_v6 = vsel %vm461_vm9, %v463_v0, %v459_v2  ;;  %v548_v11 = vsub.f32 1.0, %v547_v4 }
  0xb6   : > { %v467_v9 = vmul.f32 %v464_v6, %v889_v20  ;;  %v534_v10 = vmul.f32 %v772_v57, %v533_v3 }
  0xb7   : > { %v549_v16 = vmul.f32 %v774_v62, %v548_v11 }
  0xb8   : > { %v468_v14 = vpack.c.bf16 %v467_v9, %v466_v5  ;;  %v535_v15 = vadd.f32 %v772_v57, %v534_v10 }
  0xb9   : > { %v550_v20 = vadd.f32 %v774_v62, %v549_v16 }
  0xba   : > { %v470_v18 = vrot.slane %v468_v14, 2  ;;  %v539_v19 = vsel %vm538_vm14, %v772_v57, %v535_v15 }
  0xbb   : > { %v544_v21 = vsel %vm541_vm0, %v543_v17, %v539_v19  ;;  %v554_v25 = vsel %vm553_vm1, %v774_v62, %v550_v20 }
  0xbc   : > { %v474_v23 = vsel %vm471_vm13, %v468_v14, %v470_v18  ;;  %v561_v24 = vmul.f32 %v544_v21, %v893_v31  ;;  %v559_v26 = vsel %vm556_vm2, %v558_v22, %v554_v25 }
  0xbd   : > { %476 = vst [vmem:[%s357_s10] sm:$0xf] %v474_v23  ;;  %v562_v27 = vmul.f32 %v559_v26, %v895_v32 }
  0xbf   : > { %v563_v28 = vpack.c.bf16 %v562_v27, %v561_v24 }
  0xc1   : > { %v565_v29 = vrot.slane %v563_v28, 2 }
  0xc3   : > { %v568_v30 = vsel %vm471_vm13, %v563_v28, %v565_v29 }
  0xc4   : > { %570 = vst [vmem:[%s367_s12] sm:$0xf] %v568_v30 }
  0xc5 PF: > { %s19_s29 = sadd.s32 1, %s797_s29   ;;  %s937_s27 = smov %s793_s28 }
  0xc6   : > { %p16_p5 = scmp.ge.s32.totalorder %s19_s29, 4   ;;  %s938_s28 = smov %s940_s30 }
  0xc8   :  { %18 = sbr.rel (!%p16_p5) target bundleno = 2 (0x2), region = 90 }

// kernel: dialted_c3_pallas.4
= control target key start
LH: loop header
LB: loop body
LE: loop exit
PB: predicated region body
PF: predicated region fallthrough
CT: control target
= control target key end

     0   :  { %s1469_s24 = smov 0   ;;  %s1471_s25 = smov 0   ;;  %s1694_s0 = inlined_call_operand.vmem [shape: bf16[2,4,256], index: 0, kind: input, shape index: {}]   ;;  %s1695_s1 = inlined_call_operand.vmem [shape: bf16[4,4,36], index: 1, kind: input, shape index: {}]   ;;  %s1696_s2 = inlined_call_operand.vmem [shape: f32[4,4,1], index: 2, kind: input, shape index: {}]   ;;  %s1697_s3 = inlined_call_operand.vmem [shape: f32[4,4,1], index: 3, kind: input, shape index: {}]   ;;  %s1698_s4 = inlined_call_operand.vmem [shape: bf16[4,4,36], index: 4, kind: input, shape index: {}]   ;;  %s1699_s5 = inlined_call_operand.vmem [shape: f32[4,4,1], index: 5, kind: input, shape index: {}]   ;;  %s1700_s6 = inlined_call_operand.vmem [shape: f32[4,4,1], index: 6, kind: input, shape index: {}]   ;;  %s1701_s7 = inlined_call_operand.vmem [shape: bf16[2,4,256], index: 7, kind: output, shape index: {}]  }
   0x1   :  { %1702 = sst [smem:[#allocation7_spill]] %s1694_s0  ;;  %s1473_s26 = smov 0  }
   0x2   :  { %1703 = sst [smem:[#allocation8_spill]] %s1695_s1  ;;  %s1475_s27 = smov 0  }
   0x3   :  { %s1477_s28 = smov 0  }
   0x4 LB: > { %s26_s29 = sadd.s32 1, %s1400_s26  ;;  %s29_s30 = sadd.s32 1, %s1404_s27  ;;  %s1408_s28 = sphi %s1477_s28, %s17_s28   ;;  %s1404_s27 = sphi %s1475_s27, %s1712_s27   ;;  %s1400_s26 = sphi %s1473_s26, %s1711_s26   ;;  %s1396_s25 = sphi %s1471_s25, %s1710_s25   ;;  %s1392_s24 = sphi %s1469_s24, %s1709_s24  }
   0x5   : > { %p27_p0 = scmp.ge.s32.totalorder %s26_s29, 4  ;;  %p1214_p1 = scmp.ge.s32.totalorder %s1408_s28, 1 }
   0x6   : > { %p303_p2 = scmp.lt.s32.totalorder %s1408_s28, 9 }
   0x7   : > { %s1714_s29 = smov (%p27_p0, %s26_s29), 0  ;;  %s1716_s30 = smov (!%p27_p0, %s29_s30), %s1404_s27 }
   0x8   : > { %p304_p3 = pnand %p1214_p1, %p303_p2  ;;  %p31_p4 = scmp.ge.s32.totalorder %s1716_s30, 2 }
   0x9   : > { %p359_p5 = scmp.lt.s32.totalorder (!%p304_p3), %s1396_s25, 1  ;;  %p364_p6 = scmp.lt.s32.totalorder (!%p304_p3), %s1392_s24, 3 }
   0xa   : > { %s1718_s30 = smov (%p31_p4, %s1716_s30), 0  ;;  %307 = sbr.rel (%p304_p3) target bundleno = 838 (0x346), region = 48 }
   0xb   : > { %1704 = sst [smem:[#allocation6_spill]] %s1718_s30  ;;  %p1225_p7 = scmp.ne.s32.totalorder (!%p304_p3), %s1392_s24, 0 }
   0xc   : > { %s1705_s0 = sld [smem:[#allocation7_spill]] (!%p304_p3) }
   0xd   : > { %s1706_s1 = sld [smem:[#allocation8_spill]] (!%p304_p3) }
   0xf   : > { %s1720_s25 = smov (!%p359_p5, %s1396_s25), 1 }
  0x10   : > { %s365_s8 = scalar_select %p364_p6, %s1392_s24, 3 }
  0x11   : > { %s1274_s9 = sshll.u32 %s1720_s25, 2 }
  0x12   : > { %s363_s12 = scalar_lea.vmem %s1705_s0, %s1274_s9  ;;  %s1217_s13 = sshll.u32 %s365_s8, 1 }
  0x13   : > { %s1509_s16 = scalar_lea.vmem %s1706_s1, %s1217_s13  ;;  %s1511_s17 = sshll.u32 %s365_s8, 2 }
  0x14   : > { %s375_s23 = scalar_lea.vmem %s1697_s3, %s1511_s17  ;;  %s1524_s11 = scalar_lea.vmem %s1698_s4, %s1217_s13 }
  0x15   : > { %s383_s15 = scalar_lea.vmem %s1699_s5, %s1511_s17  ;;  %s387_s18 = scalar_lea.vmem %s1700_s6, %s1511_s17 }
  0x16   : > { %s1537_s20 = scalar_lea.vmem %s1701_s7, %s1274_s9  ;;  %397 = sbr.rel (%p1225_p7) target bundleno = 31 (0x1f), region = 52 }
  0x1b   : > { %v398_v0 = vld [vmem:[%s363_s12] sm:$0xf]  ;;  %v1410_v2 = vmov 0.0  }
  0x1c   : > { %v399_v1 = vunpack.c.l.bf16 %v398_v0  ;;  %401 = vst [vmem:[#allocation4] sm:$0xf] %v1410_v2 }
  0x1d   : > { %402 = vst [vmem:[#allocation4 + $0xc] sm:$0xf] %v1410_v2 }
  0x1e   : > { %400 = vst [vmem:[#allocation2] sm:$0xff] %v399_v1 }
  0x1f PF: > { %s1411_s0 = smov 34   ;;  %s1412_s1 = smov 2   ;;  %v408_v35 = vlaneseq  ;;  %v1419_v42 = vmov 0.0   ;;  %vm678_vm12 = vcmask 1041408   ;;  %vm674_vm13 = vcmask 293888  }
  0x20   : > { %s1413_s30 = smov 126   ;;  %s1414_s9 = smov 98   ;;  %vm728_vm14 = vcmask 1043456  }
  0x21   : > { %s1415_s12 = smov 96   ;;  %s1416_s13 = smov 32   ;;  %v1558_v36 = vand.u32 127, %v408_v35  ;;  %v407_v35 = vld [vmem:[%s375_s23] sm:$0xf] }
  0x22   : > { %s1417_s21 = smov 94   ;;  %s1418_s22 = smov 30  }
  0x23   : > { %v410_v37 = vadd.s32 128, %v1558_v36  ;;  %v1566_v41 = vand.u32 15, %v1558_v36  ;;  %vm533_vm2 = vcmp.lt.s32.totalorder %v1558_v36, 2  ;;  %vm567_vm3 = vcmp.lt.s32.totalorder %v1558_v36, 126  ;;  %s1707_s14 = scalar_lea.vmem %s1696_s2, %s1511_s17  ;;  %s1422_s23 = smov 3  }
  0x24   : > { %vm592_vm6 = vcmp.lt.s32.totalorder %v1558_v36, 98  ;;  %vm614_vm7 = vcmp.lt.s32.totalorder %v1558_v36, 96  ;;  %vm466_vm8 = vcmp.lt.s32.totalorder %v1558_v36, 34  ;;  %vm637_vm9 = vcmp.lt.s32.totalorder %v1558_v36, 94  ;;  %p1271_p8 = scmp.ne.s32.totalorder %s1392_s24, 3 }
  0x25   : > { %v1540_v3 = vld [vmem:[#allocation2] sm:$0xff]  ;;  %v1563_v40 = vand.u32 15, %v410_v37  ;;  %vm435_vm1 = vcmp.ge.s32.totalorder %v1566_v41, 2  ;;  %vm441_vm5 = vcmp.lt.s32.totalorder %v1566_v41, 14  ;;  %vm488_vm10 = vcmp.lt.s32.totalorder %v1558_v36, 32 }
  0x26   : > { %404 = vst [vmem:[#allocation4 + $0x4] sm:$0xff] %v1540_v3  ;;  %v1226_v47 = vsel %vm435_vm1, 1.0, %v1419_v42  ;;  %v1582_v58 = vsel %vm441_vm5, 1.0, %v1419_v42  ;;  %vm511_vm11 = vcmp.lt.s32.totalorder %v1558_v36, 30  ;;  %vm835_vm1 = vcmp.lt.s32.totalorder %v1558_v36, 3 }
  0x27   : > { %vm436_vm0 = vcmp.ge.s32.totalorder %v1563_v40, 2  ;;  %vm442_vm4 = vcmp.lt.s32.totalorder %v1563_v40, 14  ;;  %vm738_vm15 = vcmp.ge.s32.totalorder %v1563_v40, 3  ;;  %vm894_vm5 = vcmp.lt.s32.totalorder %v1558_v36, 83 }
  0x28   : > { %v1227_v43 = vsel %vm436_vm0, 1.0, %v1419_v42  ;;  %v1579_v56 = vsel %vm442_vm4, 1.0, %v1419_v42  ;;  %vm737_vm0 = vcmp.ge.s32.totalorder %v1566_v41, 3  ;;  %vm743_vm4 = vcmp.lt.s32.totalorder %v1566_v41, 13 }
  0x2d   : > { %v448_v4 = vld [vmem:[#allocation4 + $0x8] sm:$0xff]  ;;  %v447_v5 = vld [vmem:[#allocation4] sm:$0xff] }
  0x2e   : > { %453 = vst [vmem:[#allocation1 + $0x10] ss:$2 sm:$0xff] %v448_v4 }
  0x2f   : > { %451 = vst [vmem:[#allocation1] ss:$2 sm:$0xff] %v447_v5 }
  0x35   : > { %v1543_v6 = vld.sshfl [vmem:[#allocation1 + $0x10] sm:$0xff pattern:$0x75316420] }
  0x36   : > { %475 = vst [vmem:[#allocation1 + $0x10] ss:$2 sm:$0xff] %v448_v4  ;;  %v455_v7 = vld.sshfl [vmem:[#allocation1 + $0x8] sm:$0xff pattern:$0x75316420] }
  0x37   : > { %462 = vrot.lane.b32.xlu0 %v455_v7, %s1411_s0  ;;  %v454_v8 = vld.sshfl [vmem:[#allocation1] sm:$0xff pattern:$0x75316420] }
  0x38   : > { %473 = vst [vmem:[#allocation1] ss:$2 sm:$0xff] %v447_v5  ;;  %460 = vrot.lane.b32.xlu2 %v454_v8, %s1411_s0 }
  0x3d   : > { %v1547_v9 = vld.sshfl [vmem:[#allocation1 + $0x10] sm:$0xff pattern:$0x75316420] }
  0x3e   : > { %498 = vst [vmem:[#allocation1 + $0x10] ss:$2 sm:$0xff] %v448_v4 }
  0x3f   : > { %v476_v10 = vld.sshfl [vmem:[#allocation1] sm:$0xff pattern:$0x75316420]  ;;  %v477_v11 = vld.sshfl [vmem:[#allocation1 + $0x8] sm:$0xff pattern:$0x75316420] }
  0x40   : > { %496 = vst [vmem:[#allocation1] ss:$2 sm:$0xff] %v447_v5  ;;  %v1348_v30 = vpack.i.bf16 %v477_v11, %v476_v10 }
  0x45   : > { %v501_v12 = vld.sshfl [vmem:[#allocation1 + $0x10] sm:$0xff pattern:$0x75316420] }
  0x46   : > { %520 = vst [vmem:[#allocation1 + $0x10] ss:$2 sm:$0xff] %v448_v4 }
  0x47   : > { %v499_v13 = vld.sshfl [vmem:[#allocation1] sm:$0xff pattern:$0x75316420]  ;;  %v500_v14 = vld.sshfl [vmem:[#allocation1 + $0x8] sm:$0xff pattern:$0x75316420] }
  0x48   : > { %518 = vst [vmem:[#allocation1] ss:$2 sm:$0xff] %v447_v5 }
  0x4d   : > { %v523_v15 = vld.sshfl [vmem:[#allocation1 + $0x10] sm:$0xff pattern:$0x75316420] }
  0x4e   : > { %531 = vrot.lane.b32.xlu1 %v523_v15, %s1412_s1  ;;  %545 = vst [vmem:[#allocation1 + $0x10] ss:$2 sm:$0xff] %v448_v4 }
  0x4f   : > { %v521_v16 = vld.sshfl [vmem:[#allocation1] sm:$0xff pattern:$0x75316420]  ;;  %v522_v17 = vld.sshfl [vmem:[#allocation1 + $0x8] sm:$0xff pattern:$0x75316420] }
  0x50   : > { %543 = vst [vmem:[#allocation1] ss:$2 sm:$0xff] %v447_v5  ;;  %529 = vrot.lane.b32.xlu0 %v522_v17, %s1412_s1  ;;  %527 = vrot.lane.b32.xlu2 %v521_v16, %s1412_s1  ;;  %s1424_s1 = smov 83  }
  0x55   : > { %v1549_v18 = vld.sshfl [vmem:[#allocation1 + $0x10] sm:$0xff pattern:$0x75316420] }
  0x56   : > { %554 = vst [vmem:[#allocation1 + $0x10] ss:$2 sm:$0xff] %v448_v4 }
  0x57   : > { %v1551_v19 = vld.sshfl [vmem:[#allocation1 + $0x8] sm:$0xff pattern:$0x75316420] }
  0x58   : > { %552 = vst [vmem:[#allocation1] ss:$2 sm:$0xff] %v447_v5  ;;  %v550_v46 = vpack.c.bf16 %v1549_v18, %v1551_v19 }
  0x5a   : > { %551 = vst [vmem:[#allocation5 + $0x10] sm:$0x33] %v550_v46 }
  0x5d   : > { %v556_v20 = vld.sshfl [vmem:[#allocation1 + $0x10] sm:$0xff pattern:$0x75316420]  ;;  %v557_v21 = vld.sshfl [vmem:[#allocation1 + $0x18] sm:$0xff pattern:$0x75316420] }
  0x5e   : > { %579 = vst [vmem:[#allocation1 + $0x10] ss:$2 sm:$0xff] %v448_v4  ;;  %563 = vrot.lane.b32.xlu2 %v556_v20, %s1413_s30 }
  0x5f   : > { %v555_v22 = vld.sshfl [vmem:[#allocation1 + $0x8] sm:$0xff pattern:$0x75316420] }
  0x60   : > { %561 = vrot.lane.b32.xlu1 %v555_v22, %s1413_s30  ;;  %577 = vst [vmem:[#allocation1] ss:$2 sm:$0xff] %v447_v5 }
  0x65   : > { %v581_v23 = vld.sshfl [vmem:[#allocation1 + $0x10] sm:$0xff pattern:$0x75316420]  ;;  %v582_v24 = vld.sshfl [vmem:[#allocation1 + $0x18] sm:$0xff pattern:$0x75316420] }
  0x66   : > { %601 = vst [vmem:[#allocation1 + $0x10] ss:$2 sm:$0xff] %v448_v4  ;;  %565 = vrot.lane.b32.xlu2 %v557_v21, %s1413_s30  ;;  %s1425_s30 = smov 80  }
  0x67   : > { %v580_v25 = vld.sshfl [vmem:[#allocation1 + $0x8] sm:$0xff pattern:$0x75316420] }
  0x68   : > { %588 = vrot.lane.b32.xlu1 %v581_v23, %s1414_s9  ;;  %586 = vrot.lane.b32.xlu0 %v580_v25, %s1414_s9  ;;  %599 = vst [vmem:[#allocation1] ss:$2 sm:$0xff] %v447_v5 }
  0x6d   : > { %v604_v26 = vld.sshfl [vmem:[#allocation1 + $0x18] sm:$0xff pattern:$0x75316420]  ;;  %v603_v27 = vld.sshfl [vmem:[#allocation1 + $0x10] sm:$0xff pattern:$0x75316420] }
  0x6e   : > { %624 = vst [vmem:[#allocation1 + $0x10] ss:$2 sm:$0xff] %v448_v4  ;;  %590 = vrot.lane.b32.xlu2 %v582_v24, %s1414_s9  ;;  %s1426_s9 = smov 77  }
  0x6f   : > { %v602_v28 = vld.sshfl [vmem:[#allocation1 + $0x8] sm:$0xff pattern:$0x75316420] }
  0x70   : > { %612 = vrot.lane.b32.xlu1 %v604_v26, %s1415_s12  ;;  %v1343_v29 = vpack.i.bf16 %v603_v27, %v602_v28  ;;  %622 = vst [vmem:[#allocation1] ss:$2 sm:$0xff] %v447_v5 }
  0x72   : > { %1344 = vrot.lane.b32.xlu0 %v1343_v29, %s1415_s12  ;;  %s1427_s12 = smov 48  }
  0x75   : > { %v627_v31 = vld.sshfl [vmem:[#allocation1 + $0x18] sm:$0xff pattern:$0x75316420]  ;;  %v626_v33 = vld.sshfl [vmem:[#allocation1 + $0x10] sm:$0xff pattern:$0x75316420] }
  0x76   : > { %1349 = vrot.lane.b32.xlu2 %v1348_v30, %s1416_s13 }
  0x77   : > { %v625_v32 = vld.sshfl [vmem:[#allocation1 + $0x8] sm:$0xff pattern:$0x75316420] }
  0x78   : > { %635 = vrot.lane.b32.xlu1 %v627_v31, %s1417_s21 }
  0x7a   : > { %631 = vrot.lane.b32.xlu0 %v625_v32, %s1417_s21 }
  0x7e   : > { %507 = vrot.lane.b32.xlu2 %v500_v14, %s1418_s22 }
  0x80   : > { %464 = vrot.lane.b32.xlu1 %v1543_v6, %s1411_s0  ;;  %s1423_s0 = smov 125  }
  0x82   : > { %633 = vrot.lane.b32.xlu0 %v626_v33, %s1417_s21 }
  0x88   : > { %505 = vrot.lane.b32.xlu1 %v499_v13, %s1418_s22 }
  0x8a   : > { %486 = vrot.lane.b32.xlu0 %v1547_v9, %s1416_s13  ;;  %s1428_s13 = smov 45  }
  0x92   : > { %509 = vrot.lane.b32.xlu0 %v501_v12, %s1418_s22  ;;  %v1556_v34 = vpop.permute.xlu2 %460 }
  0xa9   : > { %v1561_v38 = vpop.permute.xlu0 %462 }
  0xaa   : > { %v528_v39 = vpop.permute.xlu2 %527  ;;  %v468_v20 = vsel %vm466_vm8, %v1556_v34, %v1561_v38  ;;  %v406_v34 = vld [vmem:[%s1707_s14] sm:$0xf] }
  0xab   : > { %v469_v23 = vmul.f32 %v1226_v47, %v468_v20 }
  0xb8   : > { %v564_v50 = vpop.permute.xlu2 %563 }
  0xc0   : > { %v532_v44 = vpop.permute.xlu1 %531  ;;  %v566_v55 = vpop.permute.xlu2 %565 }
  0xc1   : > { %v568_v57 = vsel %vm567_vm3, %v564_v50, %v566_v55 }
  0xc2   : > { %v530_v45 = vpop.permute.xlu0 %529  ;;  %v571_v60 = vmul.f32 %v1579_v56, %v568_v57 }
  0xc3   : > { %v534_v48 = vsel %vm533_vm2, %v530_v45, %v532_v44  ;;  %v535_v49 = vsel %vm533_vm2, %v528_v39, %v530_v45  ;;  %vm744_vm2 = vcmp.lt.s32.totalorder %v1563_v40, 13 }
  0xc4   : > { %v536_v51 = vmul.f32 %v1226_v47, %v535_v49  ;;  %v537_v52 = vmul.f32 %v1227_v43, %v534_v48 }
  0xc6   : > { %v538_v53 = vpack.c.bf16 %v537_v52, %v536_v51 }
  0xc8   : > { %v540_v54 = vrot.slane %v538_v53, 6  ;;  %v591_v1 = vpop.permute.xlu2 %590 }
  0xca   : > { %542 = vst [vmem:[#allocation5 + $0x8] sm:$0xcc] %v540_v54 }
  0xd0   : > { %v1350_v26 = vpop.permute.xlu2 %1349 }
  0xd1   : > { %v1352_v32 = vunpack.i.h.bf16 %v1350_v26  ;;  %v1351_v33 = vunpack.i.l.bf16 %v1350_v26 }
  0xd2   : > { %v562_v59 = vpop.permute.xlu1 %561 }
  0xd3   : > { %v569_v61 = vsel %vm567_vm3, %v562_v59, %v564_v50  ;;  %v490_v39 = vsel %vm488_vm10, %v1351_v33, %v1352_v32  ;;  %vm869_vm3 = vcmp.lt.s32.totalorder %v1558_v36, 125 }
  0xd4   : > { %v570_v62 = vmul.f32 %v1582_v58, %v569_v61 }
  0xd6   : > { %v572_v63 = vpack.c.bf16 %v571_v60, %v570_v62 }
  0xd8   : > { %v574_v0 = vrot.slane %v572_v63, 6  ;;  %v508_v46 = vpop.permute.xlu2 %507 }
  0xda   : > { %576 = vst [vmem:[#allocation5 + $0x10] sm:$0xcc] %v574_v0  ;;  %v589_v2 = vpop.permute.xlu1 %588  ;;  %v587_v4 = vpop.permute.xlu0 %586 }
  0xdb   : > { %v593_v5 = vsel %vm592_vm6, %v589_v2, %v591_v1  ;;  %v594_v6 = vsel %vm592_vm6, %v587_v4, %v589_v2  ;;  %vm916_vm6 = vcmp.lt.s32.totalorder %v1558_v36, 80 }
  0xdc   : > { %v596_v7 = vmul.f32 %v1227_v43, %v593_v5  ;;  %v595_v8 = vmul.f32 %v1226_v47, %v594_v6 }
  0xde   : > { %v597_v9 = vpack.c.bf16 %v596_v7, %v595_v8 }
  0xe0   : > { %598 = vst [vmem:[#allocation5 + $0x18] sm:$0x33] %v597_v9 }
  0xe1   : > { %v1240_v2 = vld [vmem:[#allocation5 + $0x10] sm:$0xf]  ;;  %v1278_v4 = vld [vmem:[#allocation5 + $0x14] sm:$0xf] }
  0xe2   : > { %v613_v10 = vpop.permute.xlu1 %612 }
  0xe4   : > { %v1345_v11 = vpop.permute.xlu0 %1344 }
  0xe5   : > { %v1347_v12 = vunpack.i.h.bf16 %v1345_v11  ;;  %v1346_v13 = vunpack.i.l.bf16 %v1345_v11  ;;  %v405_v11 = vld [vmem:[%s1509_s16] sm:$0x3]  ;;  %s1421_s16 = smov 51  }
  0xe7   : > { %v615_v14 = vsel %vm614_vm7, %v1347_v12, %v613_v10  ;;  %v616_v15 = vsel %vm614_vm7, %v1346_v13, %v1347_v12  ;;  %vm939_vm7 = vcmp.lt.s32.totalorder %v1558_v36, 77 }
  0xe8   : > { %v617_v16 = vpack.c.bf16 %v615_v14, %v616_v15 }
  0xea   : > { %v619_v17 = vrot.slane %v617_v16, 6  ;;  %v636_v18 = vpop.permute.xlu1 %635 }
  0xec   : > { %621 = vst [vmem:[#allocation5 + $0x18] sm:$0xcc] %v619_v17  ;;  %v632_v19 = vpop.permute.xlu0 %631 }
  0xf2   : > { %v465_v21 = vpop.permute.xlu1 %464 }
  0xf3   : > { %v467_v22 = vsel %vm466_vm8, %v1561_v38, %v465_v21  ;;  %v1420_v38 = vmov 0   ;;  %v1279_v63 = vld [vmem:[#allocation5 + $0x14] sm:$0xf0]  ;;  %v1242_v0 = vld [vmem:[#allocation5 + $0x18] sm:$0xf0]  ;;  %vm768_vm8 = vcmp.lt.s32.totalorder %v1558_v36, 51 }
  0xf4   : > { %v470_v24 = vmul.f32 %v1227_v43, %v467_v22  ;;  %v634_v25 = vpop.permute.xlu0 %633  ;;  %1353 = vset.pattern.permute.xlu1 %v1420_v38  ;;  %1354 = vset.pattern.permute.xlu2 %v1420_v38  ;;  %v1241_v5 = vor.u32 %v1279_v63, %v1240_v2  ;;  %v1639_v2 = vsel %vm738_vm15, 1.0, %v1419_v42 }
  0xf5   : > { %v638_v27 = vsel %vm637_vm9, %v634_v25, %v636_v18  ;;  %v639_v28 = vsel %vm637_vm9, %v632_v19, %v634_v25  ;;  %713 = vperm.xlu1 %1353, %v406_v34   ;;  %720 = vperm.xlu2 %1354, %v407_v35   ;;  %vm790_vm9 = vcmp.lt.s32.totalorder %v1558_v36, 48 }
  0xf6   : > { %v471_v29 = vpack.c.bf16 %v470_v24, %v469_v23  ;;  %v640_v30 = vmul.f32 %v1582_v58, %v639_v28  ;;  %v641_v31 = vmul.f32 %v1579_v56, %v638_v27  ;;  %1365 = vset.pattern.permute.xlu0 %v1420_v38 }
  0xf8   : > { %472 = vst [vmem:[#allocation5] sm:$0x33] %v471_v29  ;;  %v642_v37 = vpack.c.bf16 %v641_v31, %v640_v30 }
  0xfa   : > { %643 = vst [vmem:[#allocation5 + $0x20] sm:$0x33] %v642_v37  ;;  %v506_v47 = vpop.permute.xlu1 %505 }
  0xfb   : > { %v513_v49 = vsel %vm511_vm11, %v506_v47, %v508_v46 }
  0xfc   : > { %v487_v43 = vpop.permute.xlu0 %486  ;;  %v514_v53 = vmul.f32 %v1582_v58, %v513_v49  ;;  %v1245_v58 = vor.u32 %v1278_v4, %v1242_v0 }
  0xfd   : > { %v489_v44 = vsel %vm488_vm10, %v1352_v32, %v487_v43  ;;  %vm813_vm10 = vcmp.lt.s32.totalorder %v1558_v36, 45 }
  0xfe   : > { %v491_v45 = vpack.c.bf16 %v489_v44, %v490_v39 }
 0x100   : > { %v493_v48 = vrot.slane %v491_v45, 6 }
 0x101   : > { %v648_v50 = vld [vmem:[#allocation5 + $0x20] sm:$0x33] }
 0x102   : > { %495 = vst [vmem:[#allocation5] sm:$0xcc] %v493_v48  ;;  %v662_v51 = vunpack.c.l.b16 %v648_v50  ;;  %v663_v52 = vunpack.c.h.b16 %v648_v50 }
 0x104   : > { %v510_v54 = vpop.permute.xlu0 %509  ;;  %v668_v55 = vpack.c.b16 %v662_v51, %v662_v51  ;;  %v669_v57 = vpack.c.b16 %v663_v52, %v663_v52 }
 0x105   : > { %v512_v59 = vsel %vm511_vm11, %v508_v46, %v510_v54 }
 0x106   : > { %v515_v60 = vmul.f32 %v1579_v56, %v512_v59  ;;  %v680_v61 = vsel %vm678_vm12, %v668_v55, 0  ;;  %v683_v62 = vsel %vm678_vm12, %v669_v57, 0 }
 0x107   : > { %690 = vmatpush.bf16.msra.mxu0 %v680_v61  ;;  %703 = vmatpush.bf16.msra.mxu1 %v683_v62  ;;  %v735_v61 = vld [vmem:[%s383_s15] sm:$0xf] }
 0x108   : > { %v516_v1 = vpack.c.bf16 %v515_v60, %v514_v53  ;;  %v736_v62 = vld [vmem:[%s387_s18] sm:$0xf] }
 0x109   : > { %v1232_v6 = vld [vmem:[#allocation5] sm:$0xf]  ;;  %v1276_v56 = vld [vmem:[#allocation5 + $0x4] sm:$0xf] }
 0x10a   : > { %517 = vst [vmem:[#allocation5 + $0x8] sm:$0x33] %v516_v1 }
 0x10b   : > { %691 = vmatpush.bf16.msra.mxu0 %v1241_v5  ;;  %704 = vmatpush.bf16.msra.mxu1 %v1245_v58  ;;  %v1248_v58 = vsel %vm737_vm0, 1.0, %v1419_v42 }
 0x111   : > { %v1277_v7 = vld [vmem:[#allocation5 + $0x4] sm:$0xf0]  ;;  %v1234_v8 = vld [vmem:[#allocation5 + $0x8] sm:$0xf0] }
 0x112   : > { %v1233_v9 = vor.u32 %v1277_v7, %v1232_v6  ;;  %v1237_v10 = vor.u32 %v1276_v56, %v1234_v8 }
 0x114   : > { %692 = vmatpush.bf16.msra.mxu0 %v1233_v9  ;;  %705 = vmatpush.bf16.msra.mxu1 %v1237_v10 }
 0x117   : > { %1246 = vmatmul.msk.bf16.vlgmr.msra.gmra.mxu0 %vm674_vm13, %v405_v11  ;;  %1247 = vmatmul.msk.bf16.vlgmr.msra.gmra.mxu1 %vm674_vm13, %v405_v11 }
 0x14f   : > { %v721_v13 = vpop.permute.xlu2 %720 }
 0x167   : > { %v714_v12 = vpop.permute.xlu1 %713 }
 0x194   : > { %v694_v14 = vpop.f32.mrf.mxu0  ;;  %v707_v15 = vpop.f32.mrf.mxu1 }
 0x195   : > { %v716_v16 = vmul.f32 %v714_v12, %v694_v14  ;;  %v717_v17 = vmul.f32 %v714_v12, %v707_v15  ;;  %v1647_v12 = vsel %vm744_vm2, 1.0, %v1419_v42  ;;  %v1650_v15 = vsel %vm743_vm4, 1.0, %v1419_v42 }
 0x197   : > { %v724_v18 = vadd.f32 %v721_v13, %v717_v17  ;;  %v723_v19 = vadd.f32 %v721_v13, %v716_v16 }
 0x199   : > { %v727_v20 = vrot.slane %v724_v18, 4 }
 0x19b   : > { %v729_v21 = vsel %vm728_vm14, %v723_v19, %v727_v20 }
 0x19c   : > { %733 = vst [vmem:[#allocation4 + $0x4] sm:$0xff] %v729_v21  ;;  %v696_v22 = vpop.f32.mrf.mxu0  ;;  %v709_v23 = vpop.f32.mrf.mxu1 }
 0x1a3   : > { %v749_v24 = vld [vmem:[#allocation4] sm:$0xff]  ;;  %v750_v25 = vld [vmem:[#allocation4 + $0x8] sm:$0xff] }
 0x1a4   : > { %755 = vst [vmem:[#allocation1 + $0x10] ss:$2 sm:$0xff] %v750_v25 }
 0x1a5   : > { %753 = vst [vmem:[#allocation1] ss:$2 sm:$0xff] %v749_v24 }
 0x1ab   : > { %v1615_v26 = vld.sshfl [vmem:[#allocation1 + $0x10] sm:$0xff pattern:$0x75316420] }
 0x1ac   : > { %777 = vst [vmem:[#allocation1 + $0x10] ss:$2 sm:$0xff] %v750_v25  ;;  %v757_v27 = vld.sshfl [vmem:[#allocation1 + $0x8] sm:$0xff pattern:$0x75316420] }
 0x1ad   : > { %764 = vrot.lane.b32.xlu0 %v757_v27, %s1421_s16  ;;  %v756_v28 = vld.sshfl [vmem:[#allocation1] sm:$0xff pattern:$0x75316420] }
 0x1ae   : > { %762 = vrot.lane.b32.xlu2 %v756_v28, %s1421_s16  ;;  %775 = vst [vmem:[#allocation1] ss:$2 sm:$0xff] %v749_v24 }
 0x1b3   : > { %v780_v29 = vld.sshfl [vmem:[#allocation1 + $0x10] sm:$0xff pattern:$0x75316420] }
 0x1b4   : > { %800 = vst [vmem:[#allocation1 + $0x10] ss:$2 sm:$0xff] %v750_v25 }
 0x1b5   : > { %v778_v30 = vld.sshfl [vmem:[#allocation1] sm:$0xff pattern:$0x75316420]  ;;  %v779_v31 = vld.sshfl [vmem:[#allocation1 + $0x8] sm:$0xff pattern:$0x75316420] }
 0x1b6   : > { %798 = vst [vmem:[#allocation1] ss:$2 sm:$0xff] %v749_v24  ;;  %v1360_v60 = vpack.i.bf16 %v779_v31, %v778_v30 }
 0x1bb   : > { %v803_v32 = vld.sshfl [vmem:[#allocation1 + $0x10] sm:$0xff pattern:$0x75316420] }
 0x1bc   : > { %822 = vst [vmem:[#allocation1 + $0x10] ss:$2 sm:$0xff] %v750_v25 }
 0x1bd   : > { %v801_v33 = vld.sshfl [vmem:[#allocation1] sm:$0xff pattern:$0x75316420]  ;;  %v802_v34 = vld.sshfl [vmem:[#allocation1 + $0x8] sm:$0xff pattern:$0x75316420] }
 0x1be   : > { %820 = vst [vmem:[#allocation1] ss:$2 sm:$0xff] %v749_v24 }
 0x1c3   : > { %v825_v35 = vld.sshfl [vmem:[#allocation1 + $0x10] sm:$0xff pattern:$0x75316420] }
 0x1c4   : > { %833 = vrot.lane.b32.xlu1 %v825_v35, %s1422_s23  ;;  %847 = vst [vmem:[#allocation1 + $0x10] ss:$2 sm:$0xff] %v750_v25 }
 0x1c5   : > { %v824_v37 = vld.sshfl [vmem:[#allocation1 + $0x8] sm:$0xff pattern:$0x75316420]  ;;  %v823_v38 = vld.sshfl [vmem:[#allocation1] sm:$0xff pattern:$0x75316420] }
 0x1c6   : > { %831 = vrot.lane.b32.xlu0 %v824_v37, %s1422_s23  ;;  %829 = vrot.lane.b32.xlu2 %v823_v38, %s1422_s23  ;;  %845 = vst [vmem:[#allocation1] ss:$2 sm:$0xff] %v749_v24 }
 0x1cb   : > { %v849_v39 = vld.sshfl [vmem:[#allocation1 + $0x10] sm:$0xff pattern:$0x75316420] }
 0x1cc   : > { %856 = vst [vmem:[#allocation1 + $0x10] ss:$2 sm:$0xff] %v750_v25 }
 0x1cd   : > { %v848_v43 = vld.sshfl [vmem:[#allocation1 + $0x8] sm:$0xff pattern:$0x75316420] }
 0x1ce   : > { %854 = vst [vmem:[#allocation1] ss:$2 sm:$0xff] %v749_v24  ;;  %v852_v44 = vpack.c.bf16 %v849_v39, %v848_v43 }
 0x1d0   : > { %853 = vst [vmem:[#allocation5 + $0x10] sm:$0x33] %v852_v44 }
 0x1d3   : > { %v858_v45 = vld.sshfl [vmem:[#allocation1 + $0x10] sm:$0xff pattern:$0x75316420]  ;;  %v859_v46 = vld.sshfl [vmem:[#allocation1 + $0x18] sm:$0xff pattern:$0x75316420] }
 0x1d4   : > { %865 = vrot.lane.b32.xlu1 %v858_v45, %s1423_s0  ;;  %867 = vrot.lane.b32.xlu2 %v859_v46, %s1423_s0  ;;  %881 = vst [vmem:[#allocation1 + $0x10] ss:$2 sm:$0xff] %v750_v25 }
 0x1d5   : > { %v857_v47 = vld.sshfl [vmem:[#allocation1 + $0x8] sm:$0xff pattern:$0x75316420] }
 0x1d6   : > { %863 = vrot.lane.b32.xlu0 %v857_v47, %s1423_s0  ;;  %879 = vst [vmem:[#allocation1] ss:$2 sm:$0xff] %v749_v24 }
 0x1db   : > { %v883_v48 = vld.sshfl [vmem:[#allocation1 + $0x10] sm:$0xff pattern:$0x75316420]  ;;  %v884_v49 = vld.sshfl [vmem:[#allocation1 + $0x18] sm:$0xff pattern:$0x75316420] }
 0x1dc   : > { %890 = vrot.lane.b32.xlu1 %v883_v48, %s1424_s1  ;;  %892 = vrot.lane.b32.xlu2 %v884_v49, %s1424_s1  ;;  %903 = vst [vmem:[#allocation1 + $0x10] ss:$2 sm:$0xff] %v750_v25 }
 0x1dd   : > { %v882_v50 = vld.sshfl [vmem:[#allocation1 + $0x8] sm:$0xff pattern:$0x75316420] }
 0x1de   : > { %888 = vrot.lane.b32.xlu0 %v882_v50, %s1424_s1  ;;  %901 = vst [vmem:[#allocation1] ss:$2 sm:$0xff] %v749_v24 }
 0x1e3   : > { %v906_v51 = vld.sshfl [vmem:[#allocation1 + $0x18] sm:$0xff pattern:$0x75316420]  ;;  %v905_v52 = vld.sshfl [vmem:[#allocation1 + $0x10] sm:$0xff pattern:$0x75316420] }
 0x1e4   : > { %914 = vrot.lane.b32.xlu1 %v906_v51, %s1425_s30  ;;  %926 = vst [vmem:[#allocation1 + $0x10] ss:$2 sm:$0xff] %v750_v25 }
 0x1e5   : > { %v904_v53 = vld.sshfl [vmem:[#allocation1 + $0x8] sm:$0xff pattern:$0x75316420] }
 0x1e6   : > { %v1355_v54 = vpack.i.bf16 %v905_v52, %v904_v53  ;;  %924 = vst [vmem:[#allocation1] ss:$2 sm:$0xff] %v749_v24 }
 0x1e8   : > { %1356 = vrot.lane.b32.xlu0 %v1355_v54, %s1425_s30 }
 0x1eb   : > { %v928_v55 = vld.sshfl [vmem:[#allocation1 + $0x10] sm:$0xff pattern:$0x75316420]  ;;  %v929_v57 = vld.sshfl [vmem:[#allocation1 + $0x18] sm:$0xff pattern:$0x75316420] }
 0x1ec   : > { %935 = vrot.lane.b32.xlu1 %v928_v55, %s1426_s9  ;;  %937 = vrot.lane.b32.xlu2 %v929_v57, %s1426_s9 }
 0x1ed   : > { %v927_v59 = vld.sshfl [vmem:[#allocation1 + $0x8] sm:$0xff pattern:$0x75316420] }
 0x1f0   : > { %933 = vrot.lane.b32.xlu0 %v927_v59, %s1426_s9 }
 0x1f4   : > { %766 = vrot.lane.b32.xlu1 %v1615_v26, %s1421_s16  ;;  %1361 = vrot.lane.b32.xlu2 %v1360_v60, %s1427_s12 }
 0x1f8   : > { %788 = vrot.lane.b32.xlu0 %v780_v29, %s1427_s12 }
 0x1fc   : > { %807 = vrot.lane.b32.xlu1 %v801_v33, %s1428_s13  ;;  %809 = vrot.lane.b32.xlu2 %v802_v34, %s1428_s13 }
 0x200   : > { %811 = vrot.lane.b32.xlu0 %v803_v32, %s1428_s13 }
 0x204   : > { %1013 = vperm.xlu1 %1353, %v735_v61   ;;  %1020 = vperm.xlu2 %1354, %v736_v62  }
 0x208   : > { %v1631_v63 = vpop.permute.xlu2 %762 }
 0x21f   : > { %v1633_v0 = vpop.permute.xlu0 %764 }
 0x220   : > { %v830_v4 = vpop.permute.xlu2 %829  ;;  %v770_v47 = vsel %vm768_vm8, %v1631_v63, %v1633_v0 }
 0x221   : > { %v771_v53 = vmul.f32 %v1248_v58, %v770_v47 }
 0x22e   : > { %v868_v11 = vpop.permute.xlu2 %867 }
 0x236   : > { %v834_v1 = vpop.permute.xlu1 %833  ;;  %v893_v20 = vpop.permute.xlu2 %892 }
 0x238   : > { %v832_v5 = vpop.permute.xlu0 %831 }
 0x239   : > { %v836_v6 = vsel %vm835_vm1, %v832_v5, %v834_v1  ;;  %v837_v7 = vsel %vm835_vm1, %v830_v4, %v832_v5 }
 0x23a   : > { %v838_v56 = vmul.f32 %v1248_v58, %v837_v7  ;;  %v839_v8 = vmul.f32 %v1639_v2, %v836_v6 }
 0x23c   : > { %v840_v9 = vpack.c.bf16 %v839_v8, %v838_v56 }
 0x23e   : > { %v842_v10 = vrot.slane %v840_v9, 6 }
 0x240   : > { %844 = vst [vmem:[#allocation5 + $0x8] sm:$0xcc] %v842_v10 }
 0x246   : > { %v866_v13 = vpop.permute.xlu1 %865  ;;  %v938_v28 = vpop.permute.xlu2 %937 }
 0x247   : > { %v870_v14 = vsel %vm869_vm3, %v866_v13, %v868_v11 }
 0x248   : > { %v873_v16 = vmul.f32 %v1647_v12, %v870_v14  ;;  %v864_v17 = vpop.permute.xlu0 %863 }
 0x249   : > { %v871_v18 = vsel %vm869_vm3, %v864_v17, %v866_v13 }
 0x24a   : > { %v872_v19 = vmul.f32 %v1650_v15, %v871_v18 }
 0x24c   : > { %v874_v40 = vpack.c.bf16 %v873_v16, %v872_v19 }
 0x24e   : > { %v876_v21 = vrot.slane %v874_v40, 6  ;;  %v891_v41 = vpop.permute.xlu1 %890  ;;  %v1362_v44 = vpop.permute.xlu2 %1361 }
 0x24f   : > { %v895_v22 = vsel %vm894_vm5, %v891_v41, %v893_v20  ;;  %v1364_v50 = vunpack.i.h.bf16 %v1362_v44  ;;  %v1363_v51 = vunpack.i.l.bf16 %v1362_v44 }
 0x250   : > { %878 = vst [vmem:[#allocation5 + $0x10] sm:$0xcc] %v876_v21  ;;  %v898_v23 = vmul.f32 %v1639_v2, %v895_v22  ;;  %v889_v24 = vpop.permute.xlu0 %888  ;;  %v734_v22 = vld [vmem:[%s1524_s11] sm:$0x3] }
 0x251   : > { %v896_v25 = vsel %vm894_vm5, %v889_v24, %v891_v41  ;;  %v792_v59 = vsel %vm790_vm9, %v1363_v51, %v1364_v50 }
 0x252   : > { %v897_v42 = vmul.f32 %v1248_v58, %v896_v25 }
 0x254   : > { %v899_v26 = vpack.c.bf16 %v898_v23, %v897_v42 }
 0x256   : > { %900 = vst [vmem:[#allocation5 + $0x18] sm:$0x33] %v899_v26  ;;  %v915_v27 = vpop.permute.xlu1 %914  ;;  %v810_v4 = vpop.permute.xlu2 %809 }
 0x257   : > { %v1262_v16 = vld [vmem:[#allocation5 + $0x10] sm:$0xf]  ;;  %v1282_v17 = vld [vmem:[#allocation5 + $0x14] sm:$0xf] }
 0x25a   : > { %v1357_v29 = vpop.permute.xlu0 %1356 }
 0x25b   : > { %v1359_v30 = vunpack.i.h.bf16 %v1357_v29  ;;  %v1358_v31 = vunpack.i.l.bf16 %v1357_v29 }
 0x25d   : > { %v917_v32 = vsel %vm916_vm6, %v1359_v30, %v915_v27  ;;  %v918_v33 = vsel %vm916_vm6, %v1358_v31, %v1359_v30 }
 0x25e   : > { %v919_v34 = vpack.c.bf16 %v917_v32, %v918_v33  ;;  %v936_v35 = vpop.permute.xlu1 %935  ;;  %v1021_v27 = vpop.permute.xlu2 %1020 }
 0x25f   : > { %v940_v38 = vsel %vm939_vm7, %v936_v35, %v938_v28 }
 0x260   : > { %v921_v37 = vrot.slane %v919_v34, 6  ;;  %v943_v45 = vmul.f32 %v1647_v12, %v940_v38 }
 0x262   : > { %923 = vst [vmem:[#allocation5 + $0x18] sm:$0xcc] %v921_v37  ;;  %v934_v39 = vpop.permute.xlu0 %933 }
 0x263   : > { %v941_v43 = vsel %vm939_vm7, %v934_v39, %v936_v35 }
 0x264   : > { %v942_v46 = vmul.f32 %v1650_v15, %v941_v43 }
 0x266   : > { %v944_v48 = vpack.c.bf16 %v943_v45, %v942_v46  ;;  %v767_v49 = vpop.permute.xlu1 %766 }
 0x267   : > { %v769_v52 = vsel %vm768_vm8, %v1633_v0, %v767_v49 }
 0x268   : > { %945 = vst [vmem:[#allocation5 + $0x20] sm:$0x33] %v944_v48  ;;  %v772_v54 = vmul.f32 %v1639_v2, %v769_v52 }
 0x269   : > { %v1283_v36 = vld [vmem:[#allocation5 + $0x14] sm:$0xf0]  ;;  %v1264_v13 = vld [vmem:[#allocation5 + $0x18] sm:$0xf0] }
 0x26a   : > { %v773_v55 = vpack.c.bf16 %v772_v54, %v771_v53  ;;  %v789_v57 = vpop.permute.xlu0 %788  ;;  %v1263_v18 = vor.u32 %v1283_v36, %v1262_v16  ;;  %v1267_v19 = vor.u32 %v1282_v17, %v1264_v13 }
 0x26b   : > { %v791_v60 = vsel %vm790_vm9, %v1364_v50, %v789_v57 }
 0x26c   : > { %774 = vst [vmem:[#allocation5] sm:$0x33] %v773_v55  ;;  %v793_v61 = vpack.c.bf16 %v791_v60, %v792_v59 }
 0x26e   : > { %v795_v62 = vrot.slane %v793_v61, 6  ;;  %v808_v63 = vpop.permute.xlu1 %807 }
 0x26f   : > { %v950_v1 = vld [vmem:[#allocation5 + $0x20] sm:$0x33]  ;;  %v815_v58 = vsel %vm813_vm10, %v808_v63, %v810_v4 }
 0x270   : > { %797 = vst [vmem:[#allocation5] sm:$0xcc] %v795_v62  ;;  %v964_v0 = vunpack.c.l.b16 %v950_v1  ;;  %v965_v5 = vunpack.c.h.b16 %v950_v1  ;;  %v816_v8 = vmul.f32 %v1650_v15, %v815_v58 }
 0x272   : > { %v812_v6 = vpop.permute.xlu0 %811  ;;  %v970_v2 = vpack.c.b16 %v964_v0, %v964_v0  ;;  %v971_v7 = vpack.c.b16 %v965_v5, %v965_v5 }
 0x273   : > { %v814_v56 = vsel %vm813_vm10, %v810_v4, %v812_v6 }
 0x274   : > { %v817_v9 = vmul.f32 %v1647_v12, %v814_v56  ;;  %v980_v10 = vsel %vm678_vm12, %v970_v2, 0  ;;  %v983_v11 = vsel %vm678_vm12, %v971_v7, 0 }
 0x275   : > { %990 = vmatpush.bf16.msra.mxu2 %v980_v10  ;;  %1003 = vmatpush.bf16.msra.mxu3 %v983_v11 }
 0x276   : > { %v818_v14 = vpack.c.bf16 %v817_v9, %v816_v8  ;;  %v1014_v23 = vpop.permute.xlu1 %1013 }
 0x277   : > { %v1254_v15 = vld [vmem:[#allocation5] sm:$0xf]  ;;  %v1280_v12 = vld [vmem:[#allocation5 + $0x4] sm:$0xf] }
 0x278   : > { %819 = vst [vmem:[#allocation5 + $0x8] sm:$0x33] %v818_v14 }
 0x279   : > { %991 = vmatpush.bf16.msra.mxu2 %v1263_v18  ;;  %1004 = vmatpush.bf16.msra.mxu3 %v1267_v19 }
 0x27f   : > { %v1281_v40 = vld [vmem:[#allocation5 + $0x4] sm:$0xf0]  ;;  %v1256_v20 = vld [vmem:[#allocation5 + $0x8] sm:$0xf0] }
 0x280   : > { %v1255_v21 = vor.u32 %v1281_v40, %v1254_v15  ;;  %v1259_v41 = vor.u32 %v1280_v12, %v1256_v20 }
 0x282   : > { %992 = vmatpush.bf16.msra.mxu2 %v1255_v21  ;;  %1005 = vmatpush.bf16.msra.mxu3 %v1259_v41 }
 0x285   : > { %1268 = vmatmul.msk.bf16.vlgmr.msra.gmra.mxu2 %vm674_vm13, %v734_v22  ;;  %1269 = vmatmul.msk.bf16.vlgmr.msra.gmra.mxu3 %vm674_vm13, %v734_v22 }
 0x308   : > { %v994_v24 = vpop.f32.mrf.mxu2  ;;  %v1007_v25 = vpop.f32.mrf.mxu3 }
 0x309   : > { %v1016_v42 = vmul.f32 %v1014_v23, %v994_v24  ;;  %v1017_v26 = vmul.f32 %v1014_v23, %v1007_v25 }
 0x30b   : > { %v1024_v28 = vadd.f32 %v1021_v27, %v1017_v26  ;;  %v1023_v29 = vadd.f32 %v1021_v27, %v1016_v42 }
 0x30d   : > { %v1028_v30 = vrot.slane %v1024_v28, 4 }
 0x30f   : > { %v1029_v31 = vsel %vm728_vm14, %v1023_v29, %v1028_v30 }
 0x310   : > { %v1031_v32 = vadd.f32 %v1029_v31, %v1540_v3  ;;  %v996_v33 = vpop.f32.mrf.mxu2  ;;  %v1009_v34 = vpop.f32.mrf.mxu3 }
 0x312   : > { %v1270_v35 = vmul.f32 -1.442695, %v1031_v32 }
 0x314   : > { %1366 = vpow2.f32 %v1270_v35 }
 0x31a   : > { %v1367_v37 = vpop.eup %1366 }
 0x31b   : > { %v1035_v38 = vadd.f32 1.0, %v1367_v37 }
 0x31d   : > { %1368 = vrcp.f32 %v1035_v38  ;;  %v1047_v45 = vand.u32 2147483648, %v1035_v38  ;;  %v1045_v47 = vand.u32 2147483647, %v1035_v38  ;;  %vm1041_vm13 = vweird.f32 %v1035_v38 }
 0x31f   : > { %v1048_v49 = vor.u32 1.1754944e-38, %v1047_v45  ;;  %vm1046_vm14 = vcmp.eq.f32.partialorder %v1045_v47, 8.507059e+37 }
 0x323   : > { %v1369_v39 = vpop.eup %1368 }
 0x324   : > { %v1037_v43 = vmul.f32 %v1369_v39, %v1035_v38  ;;  %vm1042_vm11 = vweird.f32 %v1369_v39 }
 0x325   : > { %vm1043_vm15 = vmor %vm1041_vm13, %vm1042_vm11 }
 0x326   : > { %v1038_v44 = vsub.f32 1.0, %v1037_v43 }
 0x328   : > { %v1039_v46 = vmul.f32 %v1369_v39, %v1038_v44 }
 0x32a   : > { %v1040_v48 = vadd.f32 %v1369_v39, %v1039_v46 }
 0x32c   : > { %v1044_v50 = vsel %vm1043_vm15, %v1369_v39, %v1040_v48  ;;  %1056 = sbr.rel (%p1271_p8) target bundleno = 838 (0x346), region = 56 }
 0x32d   : > { %v1049_v3 = vsel %vm1046_vm14, %v1048_v49, %v1044_v50 }
 0x32e   : > { %v1051_v51 = vmul.f32 %v1049_v3, %v1031_v32 }
 0x330   : > { %1052 = vst [vmem:[#allocation2] sm:$0xff] %v1051_v51 }
 0x337   : > { %v1057_v52 = vld [vmem:[#allocation2] sm:$0xff] }
 0x338   : > { %1059 = vst [vmem:[#allocation1] ss:$2 sm:$0xff] %v1057_v52 }
 0x33f   : > { %v1060_v53 = vld.sshfl [vmem:[#allocation1] sm:$0xff pattern:$0x75316420]  ;;  %v1061_v54 = vld.sshfl [vmem:[#allocation1 + $0x8] sm:$0xff pattern:$0x75316420] }
 0x340   : > { %v1064_v55 = vpack.c.bf16 %v1061_v54, %v1060_v53 }
 0x342   : > { %v1066_v57 = vrot.slane %v1064_v55, 2 }
 0x344   : > { %v1069_v59 = vsel %vm678_vm12, %v1064_v55, %v1066_v57 }
 0x345   : > { %1071 = vst [vmem:[%s1537_s20] sm:$0xf] %v1069_v59 }
 0x346 PF: > { %s17_s28 = sadd.s32 1, %s1408_s28   ;;  %s1708_s17 = sld [smem:[#allocation6_spill]] }
 0x347   : > { %p14_p9 = scmp.ge.s32.totalorder %s17_s28, 10   ;;  %s1709_s24 = smov %s1400_s26 }
 0x348   : > { %s1710_s25 = smov %s1404_s27  ;;  %s1711_s26 = smov %s1714_s29 }
 0x349   :  { %16 = sbr.rel (!%p14_p9) target bundleno = 4 (0x4), region = 122 }
 0x34c   : > { %s1712_s27 = smov %s1708_s17 }

</bundles_post_ra>
